<compile_context>
chip_gen: v5e
topology: v5e:2x2
jax: 0.10.0
libtpu: 0.0.40
codegen_flags: <defaults>
</compile_context>

<pallas_src>
import functools
import numpy as np

import jax
import jax.numpy as jnp
from jax.experimental import pallas as pl
from jax.experimental.pallas import tpu as pltpu


# ----------------------------- small helpers -----------------------------

def _bcast_spec(shape):
    zeros = (0,) * len(shape)
    return pl.BlockSpec(tuple(shape), lambda n: zeros)


def _build_plan(matrix, n_nodes):
    """Static per-node edge list, honoring the range(0, i-1) reference quirk and
    pruning nodes whose state provably never reaches the cell output."""
    needed = {n_nodes - 1}
    for i in range(n_nodes - 1, 0, -1):
        if i in needed:
            needed.update(range(0, i - 1))
    plan = []
    for i in range(1, n_nodes):
        if i not in needed:
            plan.append(None)
            continue
        plan.append([(j, int(matrix[i, j])) for j in range(0, i - 1)])
    return plan


# ----------------------------- in-kernel compute helpers -----------------------------

def _row_tap(x, kh):
    """Rows h + kh - 1 of x with zero fill outside [0, H): stride-1 pad-1 kh tap."""
    H = x.shape[0]
    z = jnp.zeros((1, x.shape[1]), x.dtype)
    if kh == 0:
        return jnp.concatenate([z, x[:H - 1, :]], axis=0)
    if kh == 1:
        return x
    return jnp.concatenate([x[1:, :], z], axis=0)


def _gather_rows(x, idxs):
    """Gather a static list of rows; out-of-range indices give zero rows."""
    H = x.shape[0]
    z = jnp.zeros((1, x.shape[1]), x.dtype)
    return jnp.concatenate(
        [z if (i < 0 or i >= H) else x[i:i + 1, :] for i in idxs], axis=0)


def _conv3_s1(x, wk, bias, *, relu):
    """[ReLU ->] 3x3 conv (stride 1, pad 1) -> +bias in lane-dense (H, W*C) layout.
    wk(kh) returns the banded bf16 weight (W*Cin, W*Cout) for row tap kh
    (kw taps + channel mixing + BN scale are folded into the band)."""
    xb = (jnp.maximum(x, 0.0) if relu else x).astype(jnp.bfloat16)
    acc = None
    for kh in range(3):
        p = jnp.dot(_row_tap(xb, kh), wk(kh), preferred_element_type=jnp.float32)
        acc = p if acc is None else acc + p
    return acc + bias


def _conv3_s2(x, wk, bias):
    """ReLU -> 3x3 conv (stride 2, pad 1) -> +bias; (H, W*Cin) -> (H//2, (W//2)*Cout)."""
    Ho = x.shape[0] // 2
    xb = jnp.maximum(x, 0.0).astype(jnp.bfloat16)
    acc = None
    for kh in range(3):
        rows = _gather_rows(xb, [2 * ho + kh - 1 for ho in range(Ho)])
        p = jnp.dot(rows, wk(kh), preferred_element_type=jnp.float32)
        acc = p if acc is None else acc + p
    return acc + bias


def _avgpool3(x, inv_cnt, C):
    """AvgPool 3x3, stride 1, pad 1, count_include_pad=False (pure f32)."""
    H, WC = x.shape
    hsum = _row_tap(x, 0) + x + _row_tap(x, 2)
    zc = jnp.zeros((H, C), x.dtype)
    left = jnp.concatenate([zc, hsum[:, :WC - C]], axis=1)    # value from w-1
    right = jnp.concatenate([hsum[:, C:], zc], axis=1)        # value from w+1
    return (hsum + left + right) * inv_cnt


def _down(x, w_ref):
    """AvgPool2x2(stride 2) fused with a bias-free 1x1 conv (0.25 folded into w)."""
    H = x.shape[0]
    xe = _gather_rows(x, list(range(0, H, 2)))
    xo = _gather_rows(x, list(range(1, H, 2)))
    return jnp.dot((xe + xo).astype(jnp.bfloat16), w_ref[...],
                   preferred_element_type=jnp.float32)


# ----------------------------- fused whole-network kernel -----------------------------

def _fused_graph_kernel(*refs, meta):
    in_refs, out_ref = refs[:-1], refs[-1]
    ptr = [0]

    def take():
        r = in_refs[ptr[0]]
        ptr[0] += 1
        return r

    plan = meta["plan"]
    n_cells, n_stacks = meta["n_cells"], meta["n_stacks"]
    has_c3, has_c1, has_pool = meta["has_c3"], meta["has_c1"], meta["has_pool"]

    # --- stem: Conv3x3 (no relu) + folded BN ---
    x_ref = take()
    x = x_ref[0].astype(jnp.float32)                     # (H0, W0*Cin), lane-dense
    stem_w, stem_b = take(), take()
    state = _conv3_s1(x, lambda kh: stem_w[kh], stem_b[...], relu=False)

    # --- stacks of cells, separated by residual downsample blocks ---
    for s in range(n_stacks):
        C = meta["C"][s]
        c3w = take() if has_c3 else None
        c3b = take() if has_c3 else None
        c1w = take() if has_c1 else None
        c1b = take() if has_c1 else None
        inv = take() if has_pool else None
        e3 = 0
        e1 = 0
        for _cell in range(n_cells):
            states = [state]
            for edges in plan:
                if edges is None:                         # pruned dead node
                    states.append(None)
                    continue
                acc = jnp.zeros_like(state)               # empty edge list -> zeros
                for (j, op) in edges:
                    src = states[j]
                    if op == 0:                           # Zero
                        continue
                    if op == 1:                           # Skip
                        acc = acc + src
                    elif op == 2:                         # ReLU-Conv1x1-BN
                        y = jnp.dot(jnp.maximum(src, 0.0).astype(jnp.bfloat16),
                                    c1w[e1], preferred_element_type=jnp.float32)
                        acc = acc + y + c1b[e1:e1 + 1, :]
                        e1 += 1
                    elif op == 3:                         # ReLU-Conv3x3-BN
                        acc = acc + _conv3_s1(
                            src, lambda kh, _e=e3: c3w[_e, kh],
                            c3b[e3:e3 + 1, :], relu=True)
                        e3 += 1
                    elif op == 4:                         # AvgPool3x3
                        acc = acc + _avgpool3(src, inv[...], C)
                states.append(acc)
            state = states[-1]

        if s < n_stacks - 1:
            ra_w, ra_b, rb_w, rb_b, rd_w = take(), take(), take(), take(), take()
            a = _conv3_s2(state, lambda kh: ra_w[kh], ra_b[...])
            b = _conv3_s1(a, lambda kh: rb_w[kh], rb_b[...], relu=True)
            d = _down(state, rd_w)
            state = b + d

    # --- head: ReLU -> global average pool -> Linear (f32) ---
    fc_w, fc_b = take(), take()
    xr = jnp.maximum(state, 0.0)
    pooled = jnp.sum(xr, axis=0, keepdims=True)           # (1, W_last*C_last)
    logits = jnp.dot(pooled, fc_w[...],
                     preferred_element_type=jnp.float32) + fc_b[...]
    out_ref[...] = logits.reshape(out_ref.shape).astype(out_ref.dtype)


def graph_forward(meta, args, x_nchw):
    """One fused pallas_call over the whole network; grid = batch."""
    N = x_nchw.shape[0]
    H0, W0, Cin, n_classes = meta["H0"], meta["W0"], meta["Cin"], meta["n_classes"]
    x = jnp.transpose(x_nchw, (0, 2, 3, 1)).reshape(N, H0, W0 * Cin)  # NCHW -> (N, H, W*C)

    in_specs = [pl.BlockSpec((1, H0, W0 * Cin), lambda n: (n, 0, 0))]
    in_specs += [_bcast_spec(a.shape) for a in args]

    out = pl.pallas_call(
        functools.partial(_fused_graph_kernel, meta=meta),
        out_shape=jax.ShapeDtypeStruct((N, 1, n_classes), jnp.float32),
        grid=(N,),
        in_specs=in_specs,
        out_specs=pl.BlockSpec((1, 1, n_classes), lambda n: (n, 0, 0)),
        compiler_params=pltpu.CompilerParams(dimension_semantics=("parallel",)),
    )(x, *args)
    return out.reshape(N, n_classes)


# ----------------------------- host-side operand packing -----------------------------

def _band3_s1(w33, W):
    """(3,3,Cin,Cout) conv weight -> (3, W*Cin, W*Cout) banded matrices (stride 1, pad 1)."""
    _, _, Ci, Co = w33.shape
    M = np.zeros((3, W * Ci, W * Co), np.float32)
    for kh in range(3):
        for wo in range(W):
            for kw in range(3):
                wi = wo + kw - 1
                if 0 <= wi < W:
                    M[kh, wi * Ci:(wi + 1) * Ci, wo * Co:(wo + 1) * Co] = w33[kh, kw]
    return M


def _band3_s2(w33, Wi):
    """(3,3,Cin,Cout) -> (3, Wi*Cin, (Wi//2)*Cout) banded matrices (stride 2, pad 1)."""
    _, _, Ci, Co = w33.shape
    Wo = Wi // 2
    M = np.zeros((3, Wi * Ci, Wo * Co), np.float32)
    for kh in range(3):
        for wo in range(Wo):
            for kw in range(3):
                wi = 2 * wo + kw - 1
                if 0 <= wi < Wi:
                    M[kh, wi * Ci:(wi + 1) * Ci, wo * Co:(wo + 1) * Co] = w33[kh, kw]
    return M


def _band1_s1(w1, W):
    """(Cin,Cout) 1x1 conv weight -> (W*Cin, W*Cout) block-diagonal matrix."""
    Ci, Co = w1.shape
    M = np.zeros((W * Ci, W * Co), np.float32)
    for w in range(W):
        M[w * Ci:(w + 1) * Ci, w * Co:(w + 1) * Co] = w1
    return M


def _band_pool_conv(w1, Wi):
    """AvgPool2x2(s2) + Conv1x1 (no bias), 0.25 folded: (Wi*Cin, (Wi//2)*Cout)."""
    Ci, Co = w1.shape
    Wo = Wi // 2
    M = np.zeros((Wi * Ci, Wo * Co), np.float32)
    for wo in range(Wo):
        for dw in range(2):
            wi = 2 * wo + dw
            M[wi * Ci:(wi + 1) * Ci, wo * Co:(wo + 1) * Co] = 0.25 * w1
    return M


def _inv_cnt_lane(H, W, C):
    """Reciprocal valid-neighbour counts for AvgPool3x3 (count_include_pad=False),
    tiled to the lane-dense (H, W*C) layout."""
    rows = np.minimum(np.arange(H) + 2, H) - np.maximum(np.arange(H) - 1, 0)
    cols = np.minimum(np.arange(W) + 2, W) - np.maximum(np.arange(W) - 1, 0)
    inv = (1.0 / (rows[:, None] * cols[None, :]).astype(np.float32))[:, :, None]
    return np.ascontiguousarray(np.broadcast_to(inv, (H, W, C))).reshape(H, W * C)


def _np_f32(a):
    return np.asarray(a, dtype=np.float32)


def pack_operands(params, matrix, cfg, hw):
    """Fold BN, build banded bf16 conv operands and tiled biases, pack per stack."""
    n_nodes, n_cells, n_stacks = cfg["n_nodes"], cfg["n_cells"], cfg["n_stacks"]
    c_init, c_input, n_classes = cfg["c_init"], cfg["c_input"], cfg["n_classes"]
    assert hw % (2 ** (n_stacks - 1)) == 0

    plan = _build_plan(matrix, n_nodes)
    edges_flat = [e for edges in plan if edges for e in edges]
    has_c3 = any(op == 3 for _, op in edges_flat)
    has_c1 = any(op == 2 for _, op in edges_flat)
    has_pool = any(op == 4 for _, op in edges_flat)

    args = []

    # stem: BN scale folded into the (bf16) banded weight, bias kept in f32
    sw = _np_f32(params["stem"]["w"]) * _np_f32(params["stem"]["s"])[None, None, None, :]
    args.append(jnp.asarray(_band3_s1(sw, hw), jnp.bfloat16))
    args.append(jnp.asarray(np.tile(_np_f32(params["stem"]["b"]), hw).reshape(1, -1),
                            jnp.float32))

    for s in range(n_stacks):
        C = c_init * 2 ** s
        W = hw // 2 ** s
        H = hw // 2 ** s
        c3_ws, c3_bs, c1_ws, c1_bs = [], [], [], []
        for cell_idx in range(n_cells):
            cell_p = params["stacks"][s][cell_idx]
            for i_node, edges in enumerate(plan, start=1):
                if edges is None:
                    continue
                for (j, op) in edges:
                    ep = cell_p[f"{j}_{i_node}"]
                    if op == 3:
                        w = _np_f32(ep["c3_w"]) * _np_f32(ep["c3_s"])[None, None, None, :]
                        c3_ws.append(_band3_s1(w, W))
                        c3_bs.append(np.tile(_np_f32(ep["c3_b"]), W))
                    elif op == 2:
                        w = _np_f32(ep["c1_w"]) * _np_f32(ep["c1_s"])[None, :]
                        c1_ws.append(_band1_s1(w, W))
                        c1_bs.append(np.tile(_np_f32(ep["c1_b"]), W))
        if has_c3:
            args.append(jnp.asarray(np.stack(c3_ws), jnp.bfloat16))   # (n3, 3, WC, WC)
            args.append(jnp.asarray(np.stack(c3_bs), jnp.float32))    # (n3, WC)
        if has_c1:
            args.append(jnp.asarray(np.stack(c1_ws), jnp.bfloat16))   # (n1, WC, WC)
            args.append(jnp.asarray(np.stack(c1_bs), jnp.float32))    # (n1, WC)
        if has_pool:
            args.append(jnp.asarray(_inv_cnt_lane(H, W, C), jnp.float32))

        if s < n_stacks - 1:
            rp = params["res"][s]
            Wo = W // 2
            aw = _np_f32(rp["a_w"]) * _np_f32(rp["a_s"])[None, None, None, :]
            bw = _np_f32(rp["b_w"]) * _np_f32(rp["b_s"])[None, None, None, :]
            args.append(jnp.asarray(_band3_s2(aw, W), jnp.bfloat16))
            args.append(jnp.asarray(np.tile(_np_f32(rp["a_b"]), Wo).reshape(1, -1), jnp.float32))
            args.append(jnp.asarray(_band3_s1(bw, Wo), jnp.bfloat16))
            args.append(jnp.asarray(np.tile(_np_f32(rp["b_b"]), Wo).reshape(1, -1), jnp.float32))
            args.append(jnp.asarray(_band_pool_conv(_np_f32(rp["d_w"]), W), jnp.bfloat16))

    # head: global-mean (1/(H*W)) folded into the lane-expanded f32 classifier weight
    C_last = c_init * 2 ** (n_stacks - 1)
    W_last = hw // 2 ** (n_stacks - 1)
    fcw = _np_f32(params["fc_w"])                                      # (C_last, n_classes)
    fc_exp = np.tile(fcw, (W_last, 1)) / float(W_last * W_last)
    args.append(jnp.asarray(fc_exp, jnp.float32))                      # (W_last*C_last, nc)
    args.append(jnp.asarray(_np_f32(params["fc_b"]).reshape(1, -1), jnp.float32))

    meta = dict(plan=plan, n_cells=n_cells, n_stacks=n_stacks,
                has_c3=has_c3, has_c1=has_c1, has_pool=has_pool,
                C=[c_init * 2 ** s for s in range(n_stacks)],
                H0=hw, W0=hw, Cin=c_input, n_classes=n_classes)
    return meta, args


# ----------------------------- raw parameter init -----------------------------

def init_params(key, cfg):
    kiter = iter(jax.random.split(key, 1024))
    nk = lambda: next(kiter)

    def conv_w3(cin, cout):
        return jax.random.normal(nk(), (3, 3, cin, cout), jnp.float32) * np.sqrt(2.0 / (9 * cin))

    def conv_w1(cin, cout):
        return jax.random.normal(nk(), (cin, cout), jnp.float32) * np.sqrt(2.0 / cin)

    def bn_fold(c, eps=1e-5):
        gamma = 1.0 + 0.1 * jax.random.normal(nk(), (c,), jnp.float32)
        beta = 0.1 * jax.random.normal(nk(), (c,), jnp.float32)
        mean = 0.1 * jax.random.normal(nk(), (c,), jnp.float32)
        var = 1.0 + 0.1 * jnp.abs(jax.random.normal(nk(), (c,), jnp.float32))
        scale = gamma / jnp.sqrt(var + eps)
        bias = beta - mean * scale
        return scale, bias

    def edge_params(c):
        s1, b1 = bn_fold(c)
        s3, b3 = bn_fold(c)
        return {"c1_w": conv_w1(c, c), "c1_s": s1, "c1_b": b1,
                "c3_w": conv_w3(c, c), "c3_s": s3, "c3_b": b3}

    def cell_params(c):
        return {f"{i}_{j}": edge_params(c)
                for i in range(cfg["n_nodes"]) for j in range(i + 1, cfg["n_nodes"])}

    params = {}
    ss, sb = bn_fold(cfg["c_init"])
    params["stem"] = {"w": conv_w3(cfg["c_input"], cfg["c_init"]), "s": ss, "b": sb}
    params["stacks"] = [[cell_params(cfg["c_init"] * 2 ** i) for _ in range(cfg["n_cells"])]
                        for i in range(cfg["n_stacks"])]
    params["res"] = []
    for i in range(cfg["n_stacks"] - 1):
        cin = cfg["c_init"] * 2 ** i
        cout = 2 * cin
        a_s, a_b = bn_fold(cout)
        b_s, b_b = bn_fold(cout)
        params["res"].append({"a_w": conv_w3(cin, cout), "a_s": a_s, "a_b": a_b,
                              "b_w": conv_w3(cout, cout), "b_s": b_s, "b_b": b_b,
                              "d_w": conv_w1(cin, cout)})
    c_last = cfg["c_init"] * 2 ** (cfg["n_stacks"] - 1)
    params["fc_w"] = jax.random.normal(nk(), (c_last, cfg["n_classes"]), jnp.float32) / np.sqrt(c_last)
    params["fc_b"] = 0.01 * jax.random.normal(nk(), (cfg["n_classes"],), jnp.float32)
    return params


# ----------------------------- main -----------------------------

if __name__ == "__main__":
    cfg = dict(c_input=3, c_init=8, n_classes=10, n_nodes=4, n_cells=1, n_stacks=2)
    hw = 16

    key = jax.random.PRNGKey(0)
    k_params, k_x, k_m = jax.random.split(key, 3)

    params = init_params(k_params, cfg)
    x = jax.random.normal(k_x, (2, cfg["c_input"], hw, hw), jnp.float32)   # NCHW like PyTorch
    matrix = np.array(jax.random.randint(k_m, (cfg["n_nodes"], cfg["n_nodes"]), 0, 5))

    meta, args = pack_operands(params, matrix, cfg, hw)
    fwd = jax.jit(functools.partial(graph_forward, meta))
    out = jax.block_until_ready(fwd(args, x))

    assert out.shape == (2, cfg["n_classes"]) and out.dtype == jnp.float32
    print("KERNEL_OK")
</pallas_src>

<mosaic_0001>
module attributes {stable_mosaic.version = 11 : i64} {
  func.func @_fused_graph_kernel(%arg0: i32, %arg1: memref<1x16x48xf32, #tpu.memory_space<vmem>>, %arg2: memref<3x48x128xbf16, #tpu.memory_space<vmem>>, %arg3: memref<1x128xf32, #tpu.memory_space<vmem>>, %arg4: memref<1x3x128x128xbf16, #tpu.memory_space<vmem>>, %arg5: memref<1x128xf32, #tpu.memory_space<vmem>>, %arg6: memref<1x128x128xbf16, #tpu.memory_space<vmem>>, %arg7: memref<1x128xf32, #tpu.memory_space<vmem>>, %arg8: memref<3x128x128xbf16, #tpu.memory_space<vmem>>, %arg9: memref<1x128xf32, #tpu.memory_space<vmem>>, %arg10: memref<3x128x128xbf16, #tpu.memory_space<vmem>>, %arg11: memref<1x128xf32, #tpu.memory_space<vmem>>, %arg12: memref<128x128xbf16, #tpu.memory_space<vmem>>, %arg13: memref<1x3x128x128xbf16, #tpu.memory_space<vmem>>, %arg14: memref<1x128xf32, #tpu.memory_space<vmem>>, %arg15: memref<1x128x128xbf16, #tpu.memory_space<vmem>>, %arg16: memref<1x128xf32, #tpu.memory_space<vmem>>, %arg17: memref<128x10xf32, #tpu.memory_space<vmem>>, %arg18: memref<1x10xf32, #tpu.memory_space<vmem>>, %arg19: memref<1x1x10xf32, #tpu.memory_space<vmem>>) attributes {dimension_semantics = [#tpu.dimension_semantics<parallel>], iteration_bounds = array<i64: 2>, scalar_prefetch = 0 : i64, scratch_operands = 0 : i64, tpu.core_type = #tpu.core_type<tc>, window_params = [{transform_indices = @transform_0, window_bounds = array<i64: 1, 16, 48>}, {pipeline_mode = #tpu.pipeline_mode<synchronous>, transform_indices = @transform_1, window_bounds = array<i64: 3, 48, 128>}, {pipeline_mode = #tpu.pipeline_mode<synchronous>, transform_indices = @transform_2, window_bounds = array<i64: 1, 128>}, {pipeline_mode = #tpu.pipeline_mode<synchronous>, transform_indices = @transform_3, window_bounds = array<i64: 1, 3, 128, 128>}, {pipeline_mode = #tpu.pipeline_mode<synchronous>, transform_indices = @transform_4, window_bounds = array<i64: 1, 128>}, {pipeline_mode = #tpu.pipeline_mode<synchronous>, transform_indices = @transform_5, window_bounds = array<i64: 1, 128, 128>}, {pipeline_mode = #tpu.pipeline_mode<synchronous>, transform_indices = @transform_6, window_bounds = array<i64: 1, 128>}, {pipeline_mode = #tpu.pipeline_mode<synchronous>, transform_indices = @transform_7, window_bounds = array<i64: 3, 128, 128>}, {pipeline_mode = #tpu.pipeline_mode<synchronous>, transform_indices = @transform_8, window_bounds = array<i64: 1, 128>}, {pipeline_mode = #tpu.pipeline_mode<synchronous>, transform_indices = @transform_9, window_bounds = array<i64: 3, 128, 128>}, {pipeline_mode = #tpu.pipeline_mode<synchronous>, transform_indices = @transform_10, window_bounds = array<i64: 1, 128>}, {pipeline_mode = #tpu.pipeline_mode<synchronous>, transform_indices = @transform_11, window_bounds = array<i64: 128, 128>}, {pipeline_mode = #tpu.pipeline_mode<synchronous>, transform_indices = @transform_12, window_bounds = array<i64: 1, 3, 128, 128>}, {pipeline_mode = #tpu.pipeline_mode<synchronous>, transform_indices = @transform_13, window_bounds = array<i64: 1, 128>}, {pipeline_mode = #tpu.pipeline_mode<synchronous>, transform_indices = @transform_14, window_bounds = array<i64: 1, 128, 128>}, {pipeline_mode = #tpu.pipeline_mode<synchronous>, transform_indices = @transform_15, window_bounds = array<i64: 1, 128>}, {pipeline_mode = #tpu.pipeline_mode<synchronous>, transform_indices = @transform_16, window_bounds = array<i64: 128, 10>}, {pipeline_mode = #tpu.pipeline_mode<synchronous>, transform_indices = @transform_17, window_bounds = array<i64: 1, 10>}, {transform_indices = @transform_18, window_bounds = array<i64: 1, 1, 10>}]} {
    %c0 = arith.constant 0 : index
    %c0_0 = arith.constant 0 : index
    %c0_1 = arith.constant 0 : index
    %0 = vector.load %arg1[%c0, %c0_0, %c0_1] : memref<1x16x48xf32, #tpu.memory_space<vmem>>, vector<1x16x48xf32>
    %1 = vector.shape_cast %0 : vector<1x16x48xf32> to vector<16x48xf32>
    %c0_2 = arith.constant 0 : index
    %c0_3 = arith.constant 0 : index
    %2 = vector.load %arg3[%c0_2, %c0_3] : memref<1x128xf32, #tpu.memory_space<vmem>>, vector<1x128xf32>
    %3 = arith.truncf %1 : vector<16x48xf32> to vector<16x48xbf16>
    %cst = arith.constant 0.000000e+00 : bf16
    %4 = vector.broadcast %cst : bf16 to vector<1x48xbf16>
    %5 = vector.extract_strided_slice %3 {offsets = [0, 0], sizes = [15, 48], strides = [1, 1]} : vector<16x48xbf16> to vector<15x48xbf16>
    %6 = tpu.concatenate %4, %5 in 0 : vector<1x48xbf16>, vector<15x48xbf16> -> vector<16x48xbf16>
    %c0_4 = arith.constant 0 : index
    %c0_5 = arith.constant 0 : index
    %c0_6 = arith.constant 0 : index
    %7 = vector.load %arg2[%c0_4, %c0_5, %c0_6] : memref<3x48x128xbf16, #tpu.memory_space<vmem>>, vector<1x48x128xbf16>
    %8 = vector.shape_cast %7 : vector<1x48x128xbf16> to vector<48x128xbf16>
    %cst_7 = arith.constant dense<0.000000e+00> : vector<16x128xf32>
    %9 = tpu.matmul %6, %8, %cst_7 {dimension_numbers = #tpu.dot_dimension_numbers<[1], [0], [0], [1], [0, 0, 1, 1], [], []>} : vector<16x48xbf16>, vector<48x128xbf16>, vector<16x128xf32> -> vector<16x128xf32>
    %c1 = arith.constant 1 : index
    %c0_8 = arith.constant 0 : index
    %c0_9 = arith.constant 0 : index
    %10 = vector.load %arg2[%c1, %c0_8, %c0_9] : memref<3x48x128xbf16, #tpu.memory_space<vmem>>, vector<1x48x128xbf16>
    %11 = vector.shape_cast %10 : vector<1x48x128xbf16> to vector<48x128xbf16>
    %cst_10 = arith.constant dense<0.000000e+00> : vector<16x128xf32>
    %12 = tpu.matmul %3, %11, %cst_10 {dimension_numbers = #tpu.dot_dimension_numbers<[1], [0], [0], [1], [0, 0, 1, 1], [], []>} : vector<16x48xbf16>, vector<48x128xbf16>, vector<16x128xf32> -> vector<16x128xf32>
    %13 = arith.addf %9, %12 : vector<16x128xf32>
    %cst_11 = arith.constant 0.000000e+00 : bf16
    %14 = vector.broadcast %cst_11 : bf16 to vector<1x48xbf16>
    %15 = vector.extract_strided_slice %3 {offsets = [1, 0], sizes = [15, 48], strides = [1, 1]} : vector<16x48xbf16> to vector<15x48xbf16>
    %16 = tpu.concatenate %15, %14 in 0 : vector<15x48xbf16>, vector<1x48xbf16> -> vector<16x48xbf16>
    %c2 = arith.constant 2 : index
    %c0_12 = arith.constant 0 : index
    %c0_13 = arith.constant 0 : index
    %17 = vector.load %arg2[%c2, %c0_12, %c0_13] : memref<3x48x128xbf16, #tpu.memory_space<vmem>>, vector<1x48x128xbf16>
    %18 = vector.shape_cast %17 : vector<1x48x128xbf16> to vector<48x128xbf16>
    %cst_14 = arith.constant dense<0.000000e+00> : vector<16x128xf32>
    %19 = tpu.matmul %16, %18, %cst_14 {dimension_numbers = #tpu.dot_dimension_numbers<[1], [0], [0], [1], [0, 0, 1, 1], [], []>} : vector<16x48xbf16>, vector<48x128xbf16>, vector<16x128xf32> -> vector<16x128xf32>
    %20 = arith.addf %13, %19 : vector<16x128xf32>
    %21 = vector.broadcast %2 : vector<1x128xf32> to vector<16x128xf32>
    %22 = arith.addf %20, %21 : vector<16x128xf32>
    %cst_15 = arith.constant 0.000000e+00 : f32
    %23 = vector.broadcast %cst_15 : f32 to vector<16x128xf32>
    %cst_16 = arith.constant 0.000000e+00 : f32
    %24 = vector.broadcast %cst_16 : f32 to vector<16x128xf32>
    %cst_17 = arith.constant 0.000000e+00 : f32
    %25 = vector.broadcast %cst_17 : f32 to vector<16x128xf32>
    %26 = arith.maximumf %22, %25 : vector<16x128xf32>
    %27 = arith.truncf %26 : vector<16x128xf32> to vector<16x128xbf16>
    %c0_18 = arith.constant 0 : index
    %c0_19 = arith.constant 0 : index
    %c0_20 = arith.constant 0 : index
    %28 = vector.load %arg6[%c0_18, %c0_19, %c0_20] : memref<1x128x128xbf16, #tpu.memory_space<vmem>>, vector<1x128x128xbf16>
    %29 = vector.shape_cast %28 : vector<1x128x128xbf16> to vector<128x128xbf16>
    %cst_21 = arith.constant dense<0.000000e+00> : vector<16x128xf32>
    %30 = tpu.matmul %27, %29, %cst_21 {dimension_numbers = #tpu.dot_dimension_numbers<[1], [0], [0], [1], [0, 0, 1, 1], [], []>} : vector<16x128xbf16>, vector<128x128xbf16>, vector<16x128xf32> -> vector<16x128xf32>
    %31 = arith.addf %24, %30 : vector<16x128xf32>
    %c0_22 = arith.constant 0 : index
    %c0_23 = arith.constant 0 : index
    %32 = vector.load %arg7[%c0_22, %c0_23] : memref<1x128xf32, #tpu.memory_space<vmem>>, vector<1x128xf32>
    %33 = vector.broadcast %32 : vector<1x128xf32> to vector<16x128xf32>
    %34 = arith.addf %31, %33 : vector<16x128xf32>
    %c0_24 = arith.constant 0 : index
    %c0_25 = arith.constant 0 : index
    %35 = vector.load %arg5[%c0_24, %c0_25] : memref<1x128xf32, #tpu.memory_space<vmem>>, vector<1x128xf32>
    %cst_26 = arith.constant 0.000000e+00 : f32
    %36 = vector.broadcast %cst_26 : f32 to vector<16x128xf32>
    %37 = arith.maximumf %23, %36 : vector<16x128xf32>
    %38 = arith.truncf %37 : vector<16x128xf32> to vector<16x128xbf16>
    %cst_27 = arith.constant 0.000000e+00 : bf16
    %39 = vector.broadcast %cst_27 : bf16 to vector<1x128xbf16>
    %40 = vector.extract_strided_slice %38 {offsets = [0, 0], sizes = [15, 128], strides = [1, 1]} : vector<16x128xbf16> to vector<15x128xbf16>
    %41 = tpu.concatenate %39, %40 in 0 : vector<1x128xbf16>, vector<15x128xbf16> -> vector<16x128xbf16>
    %c0_28 = arith.constant 0 : index
    %c0_29 = arith.constant 0 : index
    %c0_30 = arith.constant 0 : index
    %c0_31 = arith.constant 0 : index
    %42 = vector.load %arg4[%c0_28, %c0_29, %c0_30, %c0_31] : memref<1x3x128x128xbf16, #tpu.memory_space<vmem>>, vector<1x1x128x128xbf16>
    %43 = vector.shape_cast %42 : vector<1x1x128x128xbf16> to vector<128x128xbf16>
    %cst_32 = arith.constant dense<0.000000e+00> : vector<16x128xf32>
    %44 = tpu.matmul %41, %43, %cst_32 {dimension_numbers = #tpu.dot_dimension_numbers<[1], [0], [0], [1], [0, 0, 1, 1], [], []>} : vector<16x128xbf16>, vector<128x128xbf16>, vector<16x128xf32> -> vector<16x128xf32>
    %c0_33 = arith.constant 0 : index
    %c1_34 = arith.constant 1 : index
    %c0_35 = arith.constant 0 : index
    %c0_36 = arith.constant 0 : index
    %45 = vector.load %arg4[%c0_33, %c1_34, %c0_35, %c0_36] : memref<1x3x128x128xbf16, #tpu.memory_space<vmem>>, vector<1x1x128x128xbf16>
    %46 = vector.shape_cast %45 : vector<1x1x128x128xbf16> to vector<128x128xbf16>
    %cst_37 = arith.constant dense<0.000000e+00> : vector<16x128xf32>
    %47 = tpu.matmul %38, %46, %cst_37 {dimension_numbers = #tpu.dot_dimension_numbers<[1], [0], [0], [1], [0, 0, 1, 1], [], []>} : vector<16x128xbf16>, vector<128x128xbf16>, vector<16x128xf32> -> vector<16x128xf32>
    %48 = arith.addf %44, %47 : vector<16x128xf32>
    %cst_38 = arith.constant 0.000000e+00 : bf16
    %49 = vector.broadcast %cst_38 : bf16 to vector<1x128xbf16>
    %50 = vector.extract_strided_slice %38 {offsets = [1, 0], sizes = [15, 128], strides = [1, 1]} : vector<16x128xbf16> to vector<15x128xbf16>
    %51 = tpu.concatenate %50, %49 in 0 : vector<15x128xbf16>, vector<1x128xbf16> -> vector<16x128xbf16>
    %c0_39 = arith.constant 0 : index
    %c2_40 = arith.constant 2 : index
    %c0_41 = arith.constant 0 : index
    %c0_42 = arith.constant 0 : index
    %52 = vector.load %arg4[%c0_39, %c2_40, %c0_41, %c0_42] : memref<1x3x128x128xbf16, #tpu.memory_space<vmem>>, vector<1x1x128x128xbf16>
    %53 = vector.shape_cast %52 : vector<1x1x128x128xbf16> to vector<128x128xbf16>
    %cst_43 = arith.constant dense<0.000000e+00> : vector<16x128xf32>
    %54 = tpu.matmul %51, %53, %cst_43 {dimension_numbers = #tpu.dot_dimension_numbers<[1], [0], [0], [1], [0, 0, 1, 1], [], []>} : vector<16x128xbf16>, vector<128x128xbf16>, vector<16x128xf32> -> vector<16x128xf32>
    %55 = arith.addf %48, %54 : vector<16x128xf32>
    %56 = vector.broadcast %35 : vector<1x128xf32> to vector<16x128xf32>
    %57 = arith.addf %55, %56 : vector<16x128xf32>
    %58 = arith.addf %34, %57 : vector<16x128xf32>
    %c0_44 = arith.constant 0 : index
    %c0_45 = arith.constant 0 : index
    %59 = vector.load %arg9[%c0_44, %c0_45] : memref<1x128xf32, #tpu.memory_space<vmem>>, vector<1x128xf32>
    %cst_46 = arith.constant 0.000000e+00 : f32
    %60 = vector.broadcast %cst_46 : f32 to vector<16x128xf32>
    %61 = arith.maximumf %58, %60 : vector<16x128xf32>
    %62 = arith.truncf %61 : vector<16x128xf32> to vector<16x128xbf16>
    %cst_47 = arith.constant 0.000000e+00 : bf16
    %63 = vector.broadcast %cst_47 : bf16 to vector<1x128xbf16>
    %64 = vector.extract_strided_slice %62 {offsets = [1, 0], sizes = [1, 128], strides = [1, 1]} : vector<16x128xbf16> to vector<1x128xbf16>
    %65 = vector.extract_strided_slice %62 {offsets = [3, 0], sizes = [1, 128], strides = [1, 1]} : vector<16x128xbf16> to vector<1x128xbf16>
    %66 = vector.extract_strided_slice %62 {offsets = [5, 0], sizes = [1, 128], strides = [1, 1]} : vector<16x128xbf16> to vector<1x128xbf16>
    %67 = vector.extract_strided_slice %62 {offsets = [7, 0], sizes = [1, 128], strides = [1, 1]} : vector<16x128xbf16> to vector<1x128xbf16>
    %68 = vector.extract_strided_slice %62 {offsets = [9, 0], sizes = [1, 128], strides = [1, 1]} : vector<16x128xbf16> to vector<1x128xbf16>
    %69 = vector.extract_strided_slice %62 {offsets = [11, 0], sizes = [1, 128], strides = [1, 1]} : vector<16x128xbf16> to vector<1x128xbf16>
    %70 = vector.extract_strided_slice %62 {offsets = [13, 0], sizes = [1, 128], strides = [1, 1]} : vector<16x128xbf16> to vector<1x128xbf16>
    %71 = tpu.concatenate %63, %64, %65, %66, %67, %68, %69, %70 in 0 : vector<1x128xbf16>, vector<1x128xbf16>, vector<1x128xbf16>, vector<1x128xbf16>, vector<1x128xbf16>, vector<1x128xbf16>, vector<1x128xbf16>, vector<1x128xbf16> -> vector<8x128xbf16>
    %c0_48 = arith.constant 0 : index
    %c0_49 = arith.constant 0 : index
    %c0_50 = arith.constant 0 : index
    %72 = vector.load %arg8[%c0_48, %c0_49, %c0_50] : memref<3x128x128xbf16, #tpu.memory_space<vmem>>, vector<1x128x128xbf16>
    %73 = vector.shape_cast %72 : vector<1x128x128xbf16> to vector<128x128xbf16>
    %cst_51 = arith.constant dense<0.000000e+00> : vector<8x128xf32>
    %74 = tpu.matmul %71, %73, %cst_51 {dimension_numbers = #tpu.dot_dimension_numbers<[1], [0], [0], [1], [0, 0, 1, 1], [], []>} : vector<8x128xbf16>, vector<128x128xbf16>, vector<8x128xf32> -> vector<8x128xf32>
    %75 = vector.extract_strided_slice %62 {offsets = [0, 0], sizes = [1, 128], strides = [1, 1]} : vector<16x128xbf16> to vector<1x128xbf16>
    %76 = vector.extract_strided_slice %62 {offsets = [2, 0], sizes = [1, 128], strides = [1, 1]} : vector<16x128xbf16> to vector<1x128xbf16>
    %77 = vector.extract_strided_slice %62 {offsets = [4, 0], sizes = [1, 128], strides = [1, 1]} : vector<16x128xbf16> to vector<1x128xbf16>
    %78 = vector.extract_strided_slice %62 {offsets = [6, 0], sizes = [1, 128], strides = [1, 1]} : vector<16x128xbf16> to vector<1x128xbf16>
    %79 = vector.extract_strided_slice %62 {offsets = [8, 0], sizes = [1, 128], strides = [1, 1]} : vector<16x128xbf16> to vector<1x128xbf16>
    %80 = vector.extract_strided_slice %62 {offsets = [10, 0], sizes = [1, 128], strides = [1, 1]} : vector<16x128xbf16> to vector<1x128xbf16>
    %81 = vector.extract_strided_slice %62 {offsets = [12, 0], sizes = [1, 128], strides = [1, 1]} : vector<16x128xbf16> to vector<1x128xbf16>
    %82 = vector.extract_strided_slice %62 {offsets = [14, 0], sizes = [1, 128], strides = [1, 1]} : vector<16x128xbf16> to vector<1x128xbf16>
    %83 = tpu.concatenate %75, %76, %77, %78, %79, %80, %81, %82 in 0 : vector<1x128xbf16>, vector<1x128xbf16>, vector<1x128xbf16>, vector<1x128xbf16>, vector<1x128xbf16>, vector<1x128xbf16>, vector<1x128xbf16>, vector<1x128xbf16> -> vector<8x128xbf16>
    %c1_52 = arith.constant 1 : index
    %c0_53 = arith.constant 0 : index
    %c0_54 = arith.constant 0 : index
    %84 = vector.load %arg8[%c1_52, %c0_53, %c0_54] : memref<3x128x128xbf16, #tpu.memory_space<vmem>>, vector<1x128x128xbf16>
    %85 = vector.shape_cast %84 : vector<1x128x128xbf16> to vector<128x128xbf16>
    %cst_55 = arith.constant dense<0.000000e+00> : vector<8x128xf32>
    %86 = tpu.matmul %83, %85, %cst_55 {dimension_numbers = #tpu.dot_dimension_numbers<[1], [0], [0], [1], [0, 0, 1, 1], [], []>} : vector<8x128xbf16>, vector<128x128xbf16>, vector<8x128xf32> -> vector<8x128xf32>
    %87 = arith.addf %74, %86 : vector<8x128xf32>
    %88 = vector.extract_strided_slice %62 {offsets = [1, 0], sizes = [1, 128], strides = [1, 1]} : vector<16x128xbf16> to vector<1x128xbf16>
    %89 = vector.extract_strided_slice %62 {offsets = [3, 0], sizes = [1, 128], strides = [1, 1]} : vector<16x128xbf16> to vector<1x128xbf16>
    %90 = vector.extract_strided_slice %62 {offsets = [5, 0], sizes = [1, 128], strides = [1, 1]} : vector<16x128xbf16> to vector<1x128xbf16>
    %91 = vector.extract_strided_slice %62 {offsets = [7, 0], sizes = [1, 128], strides = [1, 1]} : vector<16x128xbf16> to vector<1x128xbf16>
    %92 = vector.extract_strided_slice %62 {offsets = [9, 0], sizes = [1, 128], strides = [1, 1]} : vector<16x128xbf16> to vector<1x128xbf16>
    %93 = vector.extract_strided_slice %62 {offsets = [11, 0], sizes = [1, 128], strides = [1, 1]} : vector<16x128xbf16> to vector<1x128xbf16>
    %94 = vector.extract_strided_slice %62 {offsets = [13, 0], sizes = [1, 128], strides = [1, 1]} : vector<16x128xbf16> to vector<1x128xbf16>
    %95 = vector.extract_strided_slice %62 {offsets = [15, 0], sizes = [1, 128], strides = [1, 1]} : vector<16x128xbf16> to vector<1x128xbf16>
    %96 = tpu.concatenate %88, %89, %90, %91, %92, %93, %94, %95 in 0 : vector<1x128xbf16>, vector<1x128xbf16>, vector<1x128xbf16>, vector<1x128xbf16>, vector<1x128xbf16>, vector<1x128xbf16>, vector<1x128xbf16>, vector<1x128xbf16> -> vector<8x128xbf16>
    %c2_56 = arith.constant 2 : index
    %c0_57 = arith.constant 0 : index
    %c0_58 = arith.constant 0 : index
    %97 = vector.load %arg8[%c2_56, %c0_57, %c0_58] : memref<3x128x128xbf16, #tpu.memory_space<vmem>>, vector<1x128x128xbf16>
    %98 = vector.shape_cast %97 : vector<1x128x128xbf16> to vector<128x128xbf16>
    %cst_59 = arith.constant dense<0.000000e+00> : vector<8x128xf32>
    %99 = tpu.matmul %96, %98, %cst_59 {dimension_numbers = #tpu.dot_dimension_numbers<[1], [0], [0], [1], [0, 0, 1, 1], [], []>} : vector<8x128xbf16>, vector<128x128xbf16>, vector<8x128xf32> -> vector<8x128xf32>
    %100 = arith.addf %87, %99 : vector<8x128xf32>
    %101 = vector.broadcast %59 : vector<1x128xf32> to vector<8x128xf32>
    %102 = arith.addf %100, %101 : vector<8x128xf32>
    %c0_60 = arith.constant 0 : index
    %c0_61 = arith.constant 0 : index
    %103 = vector.load %arg11[%c0_60, %c0_61] : memref<1x128xf32, #tpu.memory_space<vmem>>, vector<1x128xf32>
    %cst_62 = arith.constant 0.000000e+00 : f32
    %104 = vector.broadcast %cst_62 : f32 to vector<8x128xf32>
    %105 = arith.maximumf %102, %104 : vector<8x128xf32>
    %106 = arith.truncf %105 : vector<8x128xf32> to vector<8x128xbf16>
    %cst_63 = arith.constant 0.000000e+00 : bf16
    %107 = vector.broadcast %cst_63 : bf16 to vector<1x128xbf16>
    %108 = vector.extract_strided_slice %106 {offsets = [0, 0], sizes = [7, 128], strides = [1, 1]} : vector<8x128xbf16> to vector<7x128xbf16>
    %109 = tpu.concatenate %107, %108 in 0 : vector<1x128xbf16>, vector<7x128xbf16> -> vector<8x128xbf16>
    %c0_64 = arith.constant 0 : index
    %c0_65 = arith.constant 0 : index
    %c0_66 = arith.constant 0 : index
    %110 = vector.load %arg10[%c0_64, %c0_65, %c0_66] : memref<3x128x128xbf16, #tpu.memory_space<vmem>>, vector<1x128x128xbf16>
    %111 = vector.shape_cast %110 : vector<1x128x128xbf16> to vector<128x128xbf16>
    %cst_67 = arith.constant dense<0.000000e+00> : vector<8x128xf32>
    %112 = tpu.matmul %109, %111, %cst_67 {dimension_numbers = #tpu.dot_dimension_numbers<[1], [0], [0], [1], [0, 0, 1, 1], [], []>} : vector<8x128xbf16>, vector<128x128xbf16>, vector<8x128xf32> -> vector<8x128xf32>
    %c1_68 = arith.constant 1 : index
    %c0_69 = arith.constant 0 : index
    %c0_70 = arith.constant 0 : index
    %113 = vector.load %arg10[%c1_68, %c0_69, %c0_70] : memref<3x128x128xbf16, #tpu.memory_space<vmem>>, vector<1x128x128xbf16>
    %114 = vector.shape_cast %113 : vector<1x128x128xbf16> to vector<128x128xbf16>
    %cst_71 = arith.constant dense<0.000000e+00> : vector<8x128xf32>
    %115 = tpu.matmul %106, %114, %cst_71 {dimension_numbers = #tpu.dot_dimension_numbers<[1], [0], [0], [1], [0, 0, 1, 1], [], []>} : vector<8x128xbf16>, vector<128x128xbf16>, vector<8x128xf32> -> vector<8x128xf32>
    %116 = arith.addf %112, %115 : vector<8x128xf32>
    %cst_72 = arith.constant 0.000000e+00 : bf16
    %117 = vector.broadcast %cst_72 : bf16 to vector<1x128xbf16>
    %118 = vector.extract_strided_slice %106 {offsets = [1, 0], sizes = [7, 128], strides = [1, 1]} : vector<8x128xbf16> to vector<7x128xbf16>
    %119 = tpu.concatenate %118, %117 in 0 : vector<7x128xbf16>, vector<1x128xbf16> -> vector<8x128xbf16>
    %c2_73 = arith.constant 2 : index
    %c0_74 = arith.constant 0 : index
    %c0_75 = arith.constant 0 : index
    %120 = vector.load %arg10[%c2_73, %c0_74, %c0_75] : memref<3x128x128xbf16, #tpu.memory_space<vmem>>, vector<1x128x128xbf16>
    %121 = vector.shape_cast %120 : vector<1x128x128xbf16> to vector<128x128xbf16>
    %cst_76 = arith.constant dense<0.000000e+00> : vector<8x128xf32>
    %122 = tpu.matmul %119, %121, %cst_76 {dimension_numbers = #tpu.dot_dimension_numbers<[1], [0], [0], [1], [0, 0, 1, 1], [], []>} : vector<8x128xbf16>, vector<128x128xbf16>, vector<8x128xf32> -> vector<8x128xf32>
    %123 = arith.addf %116, %122 : vector<8x128xf32>
    %124 = vector.broadcast %103 : vector<1x128xf32> to vector<8x128xf32>
    %125 = arith.addf %123, %124 : vector<8x128xf32>
    %126 = vector.extract_strided_slice %58 {offsets = [0, 0], sizes = [1, 128], strides = [1, 1]} : vector<16x128xf32> to vector<1x128xf32>
    %127 = vector.extract_strided_slice %58 {offsets = [2, 0], sizes = [1, 128], strides = [1, 1]} : vector<16x128xf32> to vector<1x128xf32>
    %128 = vector.extract_strided_slice %58 {offsets = [4, 0], sizes = [1, 128], strides = [1, 1]} : vector<16x128xf32> to vector<1x128xf32>
    %129 = vector.extract_strided_slice %58 {offsets = [6, 0], sizes = [1, 128], strides = [1, 1]} : vector<16x128xf32> to vector<1x128xf32>
    %130 = vector.extract_strided_slice %58 {offsets = [8, 0], sizes = [1, 128], strides = [1, 1]} : vector<16x128xf32> to vector<1x128xf32>
    %131 = vector.extract_strided_slice %58 {offsets = [10, 0], sizes = [1, 128], strides = [1, 1]} : vector<16x128xf32> to vector<1x128xf32>
    %132 = vector.extract_strided_slice %58 {offsets = [12, 0], sizes = [1, 128], strides = [1, 1]} : vector<16x128xf32> to vector<1x128xf32>
    %133 = vector.extract_strided_slice %58 {offsets = [14, 0], sizes = [1, 128], strides = [1, 1]} : vector<16x128xf32> to vector<1x128xf32>
    %134 = tpu.concatenate %126, %127, %128, %129, %130, %131, %132, %133 in 0 : vector<1x128xf32>, vector<1x128xf32>, vector<1x128xf32>, vector<1x128xf32>, vector<1x128xf32>, vector<1x128xf32>, vector<1x128xf32>, vector<1x128xf32> -> vector<8x128xf32>
    %135 = vector.extract_strided_slice %58 {offsets = [1, 0], sizes = [1, 128], strides = [1, 1]} : vector<16x128xf32> to vector<1x128xf32>
    %136 = vector.extract_strided_slice %58 {offsets = [3, 0], sizes = [1, 128], strides = [1, 1]} : vector<16x128xf32> to vector<1x128xf32>
    %137 = vector.extract_strided_slice %58 {offsets = [5, 0], sizes = [1, 128], strides = [1, 1]} : vector<16x128xf32> to vector<1x128xf32>
    %138 = vector.extract_strided_slice %58 {offsets = [7, 0], sizes = [1, 128], strides = [1, 1]} : vector<16x128xf32> to vector<1x128xf32>
    %139 = vector.extract_strided_slice %58 {offsets = [9, 0], sizes = [1, 128], strides = [1, 1]} : vector<16x128xf32> to vector<1x128xf32>
    %140 = vector.extract_strided_slice %58 {offsets = [11, 0], sizes = [1, 128], strides = [1, 1]} : vector<16x128xf32> to vector<1x128xf32>
    %141 = vector.extract_strided_slice %58 {offsets = [13, 0], sizes = [1, 128], strides = [1, 1]} : vector<16x128xf32> to vector<1x128xf32>
    %142 = vector.extract_strided_slice %58 {offsets = [15, 0], sizes = [1, 128], strides = [1, 1]} : vector<16x128xf32> to vector<1x128xf32>
    %143 = tpu.concatenate %135, %136, %137, %138, %139, %140, %141, %142 in 0 : vector<1x128xf32>, vector<1x128xf32>, vector<1x128xf32>, vector<1x128xf32>, vector<1x128xf32>, vector<1x128xf32>, vector<1x128xf32>, vector<1x128xf32> -> vector<8x128xf32>
    %144 = arith.addf %134, %143 : vector<8x128xf32>
    %145 = arith.truncf %144 : vector<8x128xf32> to vector<8x128xbf16>
    %c0_77 = arith.constant 0 : index
    %c0_78 = arith.constant 0 : index
    %146 = vector.load %arg12[%c0_77, %c0_78] : memref<128x128xbf16, #tpu.memory_space<vmem>>, vector<128x128xbf16>
    %cst_79 = arith.constant dense<0.000000e+00> : vector<8x128xf32>
    %147 = tpu.matmul %145, %146, %cst_79 {dimension_numbers = #tpu.dot_dimension_numbers<[1], [0], [0], [1], [0, 0, 1, 1], [], []>} : vector<8x128xbf16>, vector<128x128xbf16>, vector<8x128xf32> -> vector<8x128xf32>
    %148 = arith.addf %125, %147 : vector<8x128xf32>
    %cst_80 = arith.constant 0.000000e+00 : f32
    %149 = vector.broadcast %cst_80 : f32 to vector<8x128xf32>
    %cst_81 = arith.constant 0.000000e+00 : f32
    %150 = vector.broadcast %cst_81 : f32 to vector<8x128xf32>
    %cst_82 = arith.constant 0.000000e+00 : f32
    %151 = vector.broadcast %cst_82 : f32 to vector<8x128xf32>
    %152 = arith.maximumf %148, %151 : vector<8x128xf32>
    %153 = arith.truncf %152 : vector<8x128xf32> to vector<8x128xbf16>
    %c0_83 = arith.constant 0 : index
    %c0_84 = arith.constant 0 : index
    %c0_85 = arith.constant 0 : index
    %154 = vector.load %arg15[%c0_83, %c0_84, %c0_85] : memref<1x128x128xbf16, #tpu.memory_space<vmem>>, vector<1x128x128xbf16>
    %155 = vector.shape_cast %154 : vector<1x128x128xbf16> to vector<128x128xbf16>
    %cst_86 = arith.constant dense<0.000000e+00> : vector<8x128xf32>
    %156 = tpu.matmul %153, %155, %cst_86 {dimension_numbers = #tpu.dot_dimension_numbers<[1], [0], [0], [1], [0, 0, 1, 1], [], []>} : vector<8x128xbf16>, vector<128x128xbf16>, vector<8x128xf32> -> vector<8x128xf32>
    %157 = arith.addf %150, %156 : vector<8x128xf32>
    %c0_87 = arith.constant 0 : index
    %c0_88 = arith.constant 0 : index
    %158 = vector.load %arg16[%c0_87, %c0_88] : memref<1x128xf32, #tpu.memory_space<vmem>>, vector<1x128xf32>
    %159 = vector.broadcast %158 : vector<1x128xf32> to vector<8x128xf32>
    %160 = arith.addf %157, %159 : vector<8x128xf32>
    %c0_89 = arith.constant 0 : index
    %c0_90 = arith.constant 0 : index
    %161 = vector.load %arg14[%c0_89, %c0_90] : memref<1x128xf32, #tpu.memory_space<vmem>>, vector<1x128xf32>
    %cst_91 = arith.constant 0.000000e+00 : f32
    %162 = vector.broadcast %cst_91 : f32 to vector<8x128xf32>
    %163 = arith.maximumf %149, %162 : vector<8x128xf32>
    %164 = arith.truncf %163 : vector<8x128xf32> to vector<8x128xbf16>
    %cst_92 = arith.constant 0.000000e+00 : bf16
    %165 = vector.broadcast %cst_92 : bf16 to vector<1x128xbf16>
    %166 = vector.extract_strided_slice %164 {offsets = [0, 0], sizes = [7, 128], strides = [1, 1]} : vector<8x128xbf16> to vector<7x128xbf16>
    %167 = tpu.concatenate %165, %166 in 0 : vector<1x128xbf16>, vector<7x128xbf16> -> vector<8x128xbf16>
    %c0_93 = arith.constant 0 : index
    %c0_94 = arith.constant 0 : index
    %c0_95 = arith.constant 0 : index
    %c0_96 = arith.constant 0 : index
    %168 = vector.load %arg13[%c0_93, %c0_94, %c0_95, %c0_96] : memref<1x3x128x128xbf16, #tpu.memory_space<vmem>>, vector<1x1x128x128xbf16>
    %169 = vector.shape_cast %168 : vector<1x1x128x128xbf16> to vector<128x128xbf16>
    %cst_97 = arith.constant dense<0.000000e+00> : vector<8x128xf32>
    %170 = tpu.matmul %167, %169, %cst_97 {dimension_numbers = #tpu.dot_dimension_numbers<[1], [0], [0], [1], [0, 0, 1, 1], [], []>} : vector<8x128xbf16>, vector<128x128xbf16>, vector<8x128xf32> -> vector<8x128xf32>
    %c0_98 = arith.constant 0 : index
    %c1_99 = arith.constant 1 : index
    %c0_100 = arith.constant 0 : index
    %c0_101 = arith.constant 0 : index
    %171 = vector.load %arg13[%c0_98, %c1_99, %c0_100, %c0_101] : memref<1x3x128x128xbf16, #tpu.memory_space<vmem>>, vector<1x1x128x128xbf16>
    %172 = vector.shape_cast %171 : vector<1x1x128x128xbf16> to vector<128x128xbf16>
    %cst_102 = arith.constant dense<0.000000e+00> : vector<8x128xf32>
    %173 = tpu.matmul %164, %172, %cst_102 {dimension_numbers = #tpu.dot_dimension_numbers<[1], [0], [0], [1], [0, 0, 1, 1], [], []>} : vector<8x128xbf16>, vector<128x128xbf16>, vector<8x128xf32> -> vector<8x128xf32>
    %174 = arith.addf %170, %173 : vector<8x128xf32>
    %cst_103 = arith.constant 0.000000e+00 : bf16
    %175 = vector.broadcast %cst_103 : bf16 to vector<1x128xbf16>
    %176 = vector.extract_strided_slice %164 {offsets = [1, 0], sizes = [7, 128], strides = [1, 1]} : vector<8x128xbf16> to vector<7x128xbf16>
    %177 = tpu.concatenate %176, %175 in 0 : vector<7x128xbf16>, vector<1x128xbf16> -> vector<8x128xbf16>
    %c0_104 = arith.constant 0 : index
    %c2_105 = arith.constant 2 : index
    %c0_106 = arith.constant 0 : index
    %c0_107 = arith.constant 0 : index
    %178 = vector.load %arg13[%c0_104, %c2_105, %c0_106, %c0_107] : memref<1x3x128x128xbf16, #tpu.memory_space<vmem>>, vector<1x1x128x128xbf16>
    %179 = vector.shape_cast %178 : vector<1x1x128x128xbf16> to vector<128x128xbf16>
    %cst_108 = arith.constant dense<0.000000e+00> : vector<8x128xf32>
    %180 = tpu.matmul %177, %179, %cst_108 {dimension_numbers = #tpu.dot_dimension_numbers<[1], [0], [0], [1], [0, 0, 1, 1], [], []>} : vector<8x128xbf16>, vector<128x128xbf16>, vector<8x128xf32> -> vector<8x128xf32>
    %181 = arith.addf %174, %180 : vector<8x128xf32>
    %182 = vector.broadcast %161 : vector<1x128xf32> to vector<8x128xf32>
    %183 = arith.addf %181, %182 : vector<8x128xf32>
    %184 = arith.addf %160, %183 : vector<8x128xf32>
    %cst_109 = arith.constant 0.000000e+00 : f32
    %185 = vector.broadcast %cst_109 : f32 to vector<8x128xf32>
    %186 = arith.maximumf %184, %185 : vector<8x128xf32>
    %cst_110 = arith.constant dense<0.000000e+00> : vector<128xf32>
    %187 = vector.multi_reduction <add>, %186, %cst_110 [0] : vector<8x128xf32> to vector<128xf32>
    %188 = vector.shape_cast %187 : vector<128xf32> to vector<1x128xf32>
    %c0_111 = arith.constant 0 : index
    %c0_112 = arith.constant 0 : index
    %189 = vector.load %arg17[%c0_111, %c0_112] : memref<128x10xf32, #tpu.memory_space<vmem>>, vector<128x10xf32>
    %cst_113 = arith.constant dense<0.000000e+00> : vector<1x10xf32>
    %190 = tpu.matmul %188, %189, %cst_113 {dimension_numbers = #tpu.dot_dimension_numbers<[1], [0], [0], [1], [0, 0, 1, 1], [], []>} : vector<1x128xf32>, vector<128x10xf32>, vector<1x10xf32> -> vector<1x10xf32>
    %c0_114 = arith.constant 0 : index
    %c0_115 = arith.constant 0 : index
    %191 = vector.load %arg18[%c0_114, %c0_115] : memref<1x10xf32, #tpu.memory_space<vmem>>, vector<1x10xf32>
    %192 = arith.addf %190, %191 : vector<1x10xf32>
    %193 = vector.shape_cast %192 : vector<1x10xf32> to vector<1x1x10xf32>
    %c0_116 = arith.constant 0 : index
    %c0_117 = arith.constant 0 : index
    %c0_118 = arith.constant 0 : index
    %194 = vector.load %arg19[%c0_116, %c0_117, %c0_118] : memref<1x1x10xf32, #tpu.memory_space<vmem>>, vector<1x1x10xf32>
    tpu.vector_store %arg19[%c0_116, %c0_117, %c0_118], %193 {strides = array<i32>} : memref<1x1x10xf32, #tpu.memory_space<vmem>>, vector<1x1x10xf32>,
    return
  }
  func.func @transform_0(%arg0: i32) -> (i32, i32, i32) {
    %c0_i32 = arith.constant 0 : i32
    %c0_i32_0 = arith.constant 0 : i32
    %c0_i32_1 = arith.constant 0 : i32
    return %arg0, %c0_i32, %c0_i32_0 : i32, i32, i32
  }
  func.func @transform_1(%arg0: i32) -> (i32, i32, i32) {
    %c0_i32 = arith.constant 0 : i32
    %c0_i32_0 = arith.constant 0 : i32
    %c0_i32_1 = arith.constant 0 : i32
    %c0_i32_2 = arith.constant 0 : i32
    return %c0_i32, %c0_i32_0, %c0_i32_1 : i32, i32, i32
  }
  func.func @transform_2(%arg0: i32) -> (i32, i32) {
    %c0_i32 = arith.constant 0 : i32
    %c0_i32_0 = arith.constant 0 : i32
    %c0_i32_1 = arith.constant 0 : i32
    return %c0_i32, %c0_i32_0 : i32, i32
  }
  func.func @transform_3(%arg0: i32) -> (i32, i32, i32, i32) {
    %c0_i32 = arith.constant 0 : i32
    %c0_i32_0 = arith.constant 0 : i32
    %c0_i32_1 = arith.constant 0 : i32
    %c0_i32_2 = arith.constant 0 : i32
    %c0_i32_3 = arith.constant 0 : i32
    return %c0_i32, %c0_i32_0, %c0_i32_1, %c0_i32_2 : i32, i32, i32, i32
  }
  func.func @transform_4(%arg0: i32) -> (i32, i32) {
    %c0_i32 = arith.constant 0 : i32
    %c0_i32_0 = arith.constant 0 : i32
    %c0_i32_1 = arith.constant 0 : i32
    return %c0_i32, %c0_i32_0 : i32, i32
  }
  func.func @transform_5(%arg0: i32) -> (i32, i32, i32) {
    %c0_i32 = arith.constant 0 : i32
    %c0_i32_0 = arith.constant 0 : i32
    %c0_i32_1 = arith.constant 0 : i32
    %c0_i32_2 = arith.constant 0 : i32
    return %c0_i32, %c0_i32_0, %c0_i32_1 : i32, i32, i32
  }
  func.func @transform_6(%arg0: i32) -> (i32, i32) {
    %c0_i32 = arith.constant 0 : i32
    %c0_i32_0 = arith.constant 0 : i32
    %c0_i32_1 = arith.constant 0 : i32
    return %c0_i32, %c0_i32_0 : i32, i32
  }
  func.func @transform_7(%arg0: i32) -> (i32, i32, i32) {
    %c0_i32 = arith.constant 0 : i32
    %c0_i32_0 = arith.constant 0 : i32
    %c0_i32_1 = arith.constant 0 : i32
    %c0_i32_2 = arith.constant 0 : i32
    return %c0_i32, %c0_i32_0, %c0_i32_1 : i32, i32, i32
  }
  func.func @transform_8(%arg0: i32) -> (i32, i32) {
    %c0_i32 = arith.constant 0 : i32
    %c0_i32_0 = arith.constant 0 : i32
    %c0_i32_1 = arith.constant 0 : i32
    return %c0_i32, %c0_i32_0 : i32, i32
  }
  func.func @transform_9(%arg0: i32) -> (i32, i32, i32) {
    %c0_i32 = arith.constant 0 : i32
    %c0_i32_0 = arith.constant 0 : i32
    %c0_i32_1 = arith.constant 0 : i32
    %c0_i32_2 = arith.constant 0 : i32
    return %c0_i32, %c0_i32_0, %c0_i32_1 : i32, i32, i32
  }
  func.func @transform_10(%arg0: i32) -> (i32, i32) {
    %c0_i32 = arith.constant 0 : i32
    %c0_i32_0 = arith.constant 0 : i32
    %c0_i32_1 = arith.constant 0 : i32
    return %c0_i32, %c0_i32_0 : i32, i32
  }
  func.func @transform_11(%arg0: i32) -> (i32, i32) {
    %c0_i32 = arith.constant 0 : i32
    %c0_i32_0 = arith.constant 0 : i32
    %c0_i32_1 = arith.constant 0 : i32
    return %c0_i32, %c0_i32_0 : i32, i32
  }
  func.func @transform_12(%arg0: i32) -> (i32, i32, i32, i32) {
    %c0_i32 = arith.constant 0 : i32
    %c0_i32_0 = arith.constant 0 : i32
    %c0_i32_1 = arith.constant 0 : i32
    %c0_i32_2 = arith.constant 0 : i32
    %c0_i32_3 = arith.constant 0 : i32
    return %c0_i32, %c0_i32_0, %c0_i32_1, %c0_i32_2 : i32, i32, i32, i32
  }
  func.func @transform_13(%arg0: i32) -> (i32, i32) {
    %c0_i32 = arith.constant 0 : i32
    %c0_i32_0 = arith.constant 0 : i32
    %c0_i32_1 = arith.constant 0 : i32
    return %c0_i32, %c0_i32_0 : i32, i32
  }
  func.func @transform_14(%arg0: i32) -> (i32, i32, i32) {
    %c0_i32 = arith.constant 0 : i32
    %c0_i32_0 = arith.constant 0 : i32
    %c0_i32_1 = arith.constant 0 : i32
    %c0_i32_2 = arith.constant 0 : i32
    return %c0_i32, %c0_i32_0, %c0_i32_1 : i32, i32, i32
  }
  func.func @transform_15(%arg0: i32) -> (i32, i32) {
    %c0_i32 = arith.constant 0 : i32
    %c0_i32_0 = arith.constant 0 : i32
    %c0_i32_1 = arith.constant 0 : i32
    return %c0_i32, %c0_i32_0 : i32, i32
  }
  func.func @transform_16(%arg0: i32) -> (i32, i32) {
    %c0_i32 = arith.constant 0 : i32
    %c0_i32_0 = arith.constant 0 : i32
    %c0_i32_1 = arith.constant 0 : i32
    return %c0_i32, %c0_i32_0 : i32, i32
  }
  func.func @transform_17(%arg0: i32) -> (i32, i32) {
    %c0_i32 = arith.constant 0 : i32
    %c0_i32_0 = arith.constant 0 : i32
    %c0_i32_1 = arith.constant 0 : i32
    return %c0_i32, %c0_i32_0 : i32, i32
  }
  func.func @transform_18(%arg0: i32) -> (i32, i32, i32) {
    %c0_i32 = arith.constant 0 : i32
    %c0_i32_0 = arith.constant 0 : i32
    %c0_i32_1 = arith.constant 0 : i32
    return %arg0, %c0_i32, %c0_i32_0 : i32, i32, i32
  }
}

</mosaic_0001>

<bundles_post_ra>
// kernel: graph_forward.1
= control target key start
LH: loop header
LB: loop body
LE: loop exit
PB: predicated region body
PF: predicated region fallthrough
CT: control target
= control target key end

     0   :  { %s4150_s0 = inlined_call_operand.vmem [shape: f32[2,16,48], index: 0, kind: input, shape index: {}]   ;;  %s4151_s1 = inlined_call_operand.hbm [shape: bf16[3,48,128], index: 1, kind: input, shape index: {}]   ;;  %s4152_s2 = inlined_call_operand.hbm [shape: f32[1,128], index: 2, kind: input, shape index: {}]   ;;  %s4153_s3 = inlined_call_operand.vmem [shape: bf16[1,3,128,128], index: 3, kind: input, shape index: {}]   ;;  %s4154_s4 = inlined_call_operand.hbm [shape: f32[1,128], index: 4, kind: input, shape index: {}]   ;;  %s4155_s5 = inlined_call_operand.vmem [shape: bf16[1,128,128], index: 5, kind: input, shape index: {}]   ;;  %s4156_s6 = inlined_call_operand.vmem [shape: f32[1,128], index: 6, kind: input, shape index: {}]   ;;  %s4157_s7 = inlined_call_operand.vmem [shape: bf16[3,128,128], index: 7, kind: input, shape index: {}]   ;;  %s4158_s8 = inlined_call_operand.vmem [shape: f32[1,128], index: 8, kind: input, shape index: {}]   ;;  %s4159_s9 = inlined_call_operand.hbm [shape: bf16[3,128,128], index: 9, kind: input, shape index: {}]   ;;  %s4160_s10 = inlined_call_operand.vmem [shape: f32[1,128], index: 10, kind: input, shape index: {}]   ;;  %s4161_s11 = inlined_call_operand.hbm [shape: bf16[128,128], index: 11, kind: input, shape index: {}]   ;;  %s4162_s12 = inlined_call_operand.hbm [shape: bf16[1,3,128,128], index: 12, kind: input, shape index: {}]   ;;  %s4163_s13 = inlined_call_operand.vmem [shape: f32[1,128], index: 13, kind: input, shape index: {}]   ;;  %s4164_s14 = inlined_call_operand.hbm [shape: bf16[1,128,128], index: 14, kind: input, shape index: {}]   ;;  %s4165_s15 = inlined_call_operand.vmem [shape: f32[1,128], index: 15, kind: input, shape index: {}]   ;;  %s4166_s16 = inlined_call_operand.vmem [shape: f32[128,10], index: 16, kind: input, shape index: {}]   ;;  %s4167_s17 = inlined_call_operand.vmem [shape: f32[1,10], index: 17, kind: input, shape index: {}]   ;;  %s4168_s18 = inlined_call_operand.hbm [shape: f32[2,1,10], index: 18, kind: output, shape index: {}]  }
   0x1   :  { %4178 = sst [smem:[#allocation27_spill]] %s4150_s0 }
   0x2   :  { %4179 = sst [smem:[#allocation28_spill]] %s4151_s1 }
   0x3   :  { %4180 = sst [smem:[#allocation29_spill]] %s4152_s2 }
   0x4   :  { %4181 = sst [smem:[#allocation30_spill]] %s4159_s9 }
   0x5   :  { %4182 = sst [smem:[#allocation31_spill]] %s4162_s12 }
   0x6   :  { %4183 = sst [smem:[#allocation32_spill]] %s4167_s17 }
   0x7   :  { %4184 = sst [smem:[#allocation33_spill]] %s4168_s18 }
   0x8   :  { %23 = vsyncpa [#allocation3], 0 }
   0x9   :  { %24 = vsyncpa [#allocation6], 0 }
   0xa   :  { %25 = vsyncpa [#allocation9], 0 }
   0xb   :  { %26 = vsyncpa [#allocation12], 0 }
   0xc   :  { %27 = vsyncpa [#allocation4], 0 }
   0xd   :  { %29 = vsyncpa [#allocation4 + $0x1], 0  ;;  %s3643_s27 = smov 0   ;;  %s3645_s28 = smov 0  }
   0xe   :  { %s3647_s29 = smov 0   ;;  %s3649_s30 = smov 0  }
   0xf LB: > { %4185 = sst [smem:[#allocation20_spill]] %s3524_s27  ;;  %s3664_s0 = sadd.s32 4294967295, %s3536_s30   ;;  %s3536_s30 = sphi %s3649_s30, %s4215_s30   ;;  %s3532_s29 = sphi %s3647_s29, %s4217_s29   ;;  %s3528_s28 = sphi %s3645_s28, %s4219_s28   ;;  %s3524_s27 = sphi %s3643_s27, %s4218_s27  }
  0x10   : > { %4186 = sst [smem:[#allocation21_spill]] %s3532_s29  ;;  %s2393_s19 = sadd.s32 4294967294, %s3536_s30  }
  0x11   : > { %4187 = sst [smem:[#allocation22_spill]] %s3536_s30  ;;  %s3668_s1 = sadd.s32 1, %s3536_s30  }
  0x12   : > { %4188 = sst [smem:[#allocation23_spill]] %s3668_s1  ;;  %s425_s20 = sadd.s32 1, %s3532_s29 }
  0x13   : > { %s422_s21 = ssub.s32 %s3536_s30, %s3668_s1  ;;  %p435_p0 = scmp.ne.s32.totalorder %s3532_s29, %s3528_s28 }
  0x14   : > { %p423_p1 = scmp.eq.s32.totalorder %s422_s21, 0  ;;  %p436_p2 = scmp.eq.s32.totalorder %s3664_s0, 1 }
  0x15   : > { %p441_p3 = scmp.ne.s32.totalorder %s3528_s28, %s3524_s27  ;;  %p442_p4 = scmp.eq.s32.totalorder %s2393_s19, 1 }
  0x16   : > { %s3679_s22 = scalar_select %p423_p1, %s3532_s29, %s425_s20  }
  0x17   : > { %p3681_p5 = por %p436_p2, %p435_p0  ;;  %p3685_p6 = por %p442_p4, %p441_p3 }
  0x18   : > { %4189 = sst [smem:[#allocation24_spill]] %s3679_s22  ;;  %p2394_p7 = scmp.ge.s32.totalorder %s3536_s30, 1 }
  0x19   : > { %s4190_s2 = scalar_select %p3681_p5, 1, 0 }
  0x1a   : > { %s4192_s23 = scalar_select %p3685_p6, 1, 0 }
  0x1b   : > { %4191 = sst [smem:[#allocation25_spill]] %s4190_s2  ;;  %p449_p8 = scmp.lt.s32.totalorder %s3536_s30, 3 }
  0x1c   : > { %4193 = sst [smem:[#allocation26_spill]] %s4192_s23  ;;  %p3184_p9 = scmp.eq.s32.totalorder %s3664_s0, 0 }
  0x1d   : > { %p3692_p10 = pnand %p2394_p7, %p449_p8  ;;  %s4195_s19 = sld [smem:[#allocation29_spill]] }
  0x1e   : > { %s3538_s21 = smov [#allocation5]   ;;  %s4197_s9 = sld [smem:[#allocation30_spill]] }
  0x1f   : > { %p3158_p11 = pneg %p3692_p10  ;;  %s477_s22 = sshll.u32 %s3538_s21, 4  ;;  %s478_s22 = int_to_ptr.vmem [resolvable:$true] %s477_s22 }
  0x20   : > { %s3539_s25 = smov [#allocation8]   ;;  %s4198_s12 = sld [smem:[#allocation31_spill]] }
  0x21   : > { %p3703_p12 = pnand %p3184_p9, %p3158_p11  ;;  %s515_s26 = sshll.u32 %s3539_s25, 4  ;;  %s516_s26 = int_to_ptr.vmem [resolvable:$true] %s515_s26 }
  0x22   : > { %s3540_s2 = smov 64   ;;  %s3541_s17 = smov 4  }
  0x23   : > { %s475_s20 = sshll.u32 %s4195_s19, 4  ;;  %s3543_s19 = smov [#allocation2]   ;;  %s476_s20 = int_to_ptr.hbm [resolvable:$true] %s475_s20 }
  0x24   : > { %s513_s27 = sshll.u32 %s4197_s9, 4  ;;  %s4199_s9 = sld [smem:[#allocation28_spill]]  ;;  %s514_s27 = int_to_ptr.hbm [resolvable:$true] %s513_s27 }
  0x25   : > { %3164 = dma.hbm_to_vmem [thread:$0]  (!%p3703_p12), %s476_s20, 16, %s478_s22, [#allocation6]  }
  0x26   : > { %s544_s30 = sshll.u32 %s4198_s12, 4  ;;  %s3542_s20 = smov [#allocation11]   ;;  %s545_s30 = int_to_ptr.hbm [resolvable:$true] %s544_s30 }
  0x27   : > { %3170 = dma.hbm_to_vmem [thread:$0]  (!%p3703_p12), %s514_s27, 3072, %s516_s26, [#allocation9], %s3540_s2, %s3540_s2, %s3541_s17  }
  0x28   : > { %s546_s25 = sshll.u32 %s3542_s20, 4  ;;  %s462_s21 = sshll.u32 %s3543_s19, 4  ;;  %s547_s25 = int_to_ptr.vmem [resolvable:$true] %s546_s25  ;;  %s463_s21 = int_to_ptr.vmem [resolvable:$true] %s462_s21 }
  0x29   : > { %3176 = dma.hbm_to_vmem [thread:$0]  (!%p3703_p12), %s545_s30, 3072, %s547_s25, [#allocation12], %s3540_s2, %s3540_s2, %s3541_s17  }
  0x2a   : > { %s460_s22 = sshll.u32 %s4199_s9, 4  ;;  %s490_s27 = sshll.u32 %s4154_s4, 4  ;;  %s461_s22 = int_to_ptr.hbm [resolvable:$true] %s460_s22  ;;  %s491_s27 = int_to_ptr.hbm [resolvable:$true] %s490_s27 }
  0x2b   : > { %3161 = dma.hbm_to_vmem [thread:$0]  (!%p3703_p12), %s461_s22, 1152, %s463_s21, [#allocation3], %s3540_s2, %s3540_s2, %s3541_s17  }
  0x2c   : > { %s530_s1 = sshll.u32 %s4161_s11, 4  ;;  %s3544_s30 = smov [#allocation7]   ;;  %s531_s1 = int_to_ptr.hbm [resolvable:$true] %s530_s1 }
  0x2d   : > { %s492_s23 = sshll.u32 %s3544_s30, 4  ;;  %s3545_s12 = smov [#allocation10]   ;;  %s493_s23 = int_to_ptr.vmem [resolvable:$true] %s492_s23 }
  0x2e   : > { %3167 = dma.hbm_to_vmem [thread:$0]  (!%p3703_p12), %s491_s27, 16, %s493_s23, [#allocation6]  }
  0x2f   : > { %s532_s18 = sshll.u32 %s3545_s12, 4  ;;  %s561_s19 = sshll.u32 %s4164_s14, 4  ;;  %s533_s18 = int_to_ptr.vmem [resolvable:$true] %s532_s18  ;;  %s562_s19 = int_to_ptr.hbm [resolvable:$true] %s561_s19 }
  0x30   : > { %3173 = dma.hbm_to_vmem [thread:$0]  (!%p3703_p12), %s531_s1, 1024, %s533_s18, [#allocation9], %s3540_s2, %s3540_s2, %s3541_s17  }
  0x31   : > { %s3546_s22 = smov [#allocation13]   ;;  %596 = sbr.rel (%p3692_p10) target bundleno = 973 (0x3cd), region = 92 }
  0x32   : > { %s563_s21 = sshll.u32 %s3546_s22, 4  ;;  %s564_s21 = int_to_ptr.vmem [resolvable:$true] %s563_s21 }
  0x33   : > { %3179 = dma.hbm_to_vmem [thread:$0]  (!%p3703_p12), %s562_s19, 1024, %s564_s21, [#allocation12], %s3540_s2, %s3540_s2, %s3541_s17  }
  0x36   : > { %3503 = dma.done.wait (%p3184_p9), [#allocation3], 1152  }
  0x37   : > { %3505 = vsyncadd (%p3184_p9), [#allocation3], 4294966144 }
  0x38   : > { %3507 = dma.done.wait (%p3184_p9), [#allocation6], 32  }
  0x39   : > { %3509 = vsyncadd (%p3184_p9), [#allocation6], 4294967264 }
  0x3a   : > { %3511 = dma.done.wait (%p3184_p9), [#allocation9], 4096  }
  0x3b   : > { %3513 = vsyncadd (%p3184_p9), [#allocation9], 4294963200 }
  0x3c   : > { %3515 = dma.done.wait (%p3184_p9), [#allocation12], 4096  }
  0x3d   : > { %3517 = vsyncadd (%p3184_p9), [#allocation12], 4294963200  ;;  %p680_p13 = scmp.lt.s32.totalorder %s3664_s0, 1  ;;  %v3004_v0 = vld [vmem:[#allocation2 + $0x28] sm:$0xff]  ;;  %v3001_v1 = vld [vmem:[#allocation2 + $0x10] sm:$0xff]  ;;  %s4200_s27 = sld [smem:[#allocation27_spill]] }
  0x3e   : > { %v3007_v2 = vld [vmem:[#allocation2 + $0x40] sm:$0xff]  ;;  %747 = vmatpush.bf16.msra.mxu0 %v3004_v0  ;;  %782 = vmatpush.bf16.msra.mxu1 %v3001_v1  ;;  %v3000_v4 = vld [vmem:[#allocation2 + $0x8] sm:$0xff]  ;;  %v3006_v5 = vld [vmem:[#allocation2 + $0x38] sm:$0xff]  ;;  %vm739_vm0 = vcmask 392192   ;;  %vm704_vm1 = vcmask 1040384   ;;  %vm794_vm3 = vcmask 1047552  }
  0x3f   : > { %s681_s17 = scalar_select %p680_p13, %s3664_s0, 1  ;;  %v3003_v3 = vld [vmem:[#allocation2 + $0x20] sm:$0xff]  ;;  %831 = vmatpush.bf16.msra.mxu2 %v3007_v2  ;;  %v3002_v10 = vld [vmem:[#allocation2 + $0x18] sm:$0xff]  ;;  %v3005_v15 = vld [vmem:[#allocation2 + $0x30] sm:$0xff]  ;;  %vm705_vm2 = vsmask.f32 256 }
  0x40   : > { %v2999_v11 = vld [vmem:[#allocation2] sm:$0xff]  ;;  %v3015_v14 = vld [vmem:[%s4155_s5 + $0x38] sm:$0xff]  ;;  %vm795_vm4 = vsmask.f32 7424  ;;  %v3014_v20 = vld [vmem:[%s4155_s5 + $0x30] sm:$0xff]  ;;  %v3547_v55 = vmov 0  }
  0x41   : > { %s2998_s29 = sshll.u32 %s681_s17, 4  ;;  %v3039_v16 = vld [vmem:[%s4153_s3 + $0xb8] sm:$0xff]  ;;  %918 = vmatpush.bf16.msra.mxu3 %v3015_v14  ;;  %v3030_v23 = vld [vmem:[%s4153_s3 + $0x70] sm:$0xff]  ;;  %vm3797_vm5 = vmand %vm704_vm1, %vm705_vm2  ;;  %vm1210_vm7 = vsmask.f32 1280  ;;  %vm1209_vm8 = vcmask 1041408  }
  0x42   : > { %748 = vmatpush.bf16.msra.mxu0 %v3003_v3  ;;  %783 = vmatpush.bf16.msra.mxu1 %v3000_v4  ;;  %v3031_v17 = vld [vmem:[%s4153_s3 + $0x78] sm:$0xff]  ;;  %v3038_v27 = vld [vmem:[%s4153_s3 + $0xb0] sm:$0xff]  ;;  %vm796_vm6 = vmand %vm794_vm3, %vm795_vm4  ;;  %vm1218_vm9 = vcmask 1042432   ;;  %vm1219_vm11 = vsmask.f32 2304  ;;  %vm1227_vm12 = vcmask 1043456  }
  0x43   : > { %s684_s9 = scalar_lea.vmem %s4200_s27, %s2998_s29  ;;  %832 = vmatpush.bf16.msra.mxu2 %v3006_v5  ;;  %v3023_v19 = vld [vmem:[%s4153_s3 + $0x38] sm:$0xff]  ;;  %v3022_v28 = vld [vmem:[%s4153_s3 + $0x30] sm:$0xff]  ;;  %v3029_v31 = vld [vmem:[%s4153_s3 + $0x68] sm:$0xff]  ;;  %vm1228_vm13 = vsmask.f32 3328  ;;  %vm1796_vm2 = vcmask 1046528  }
  0x44   : > { %v686_v6 = vld [vmem:[%s684_s9] sm:$0xff]  ;;  %v687_v7 = vld [vmem:[%s684_s9 + $0x8] sm:$0xff]  ;;  %v3035_v39 = vld [vmem:[%s4153_s3 + $0x98] sm:$0xff]  ;;  %s678_s1 = sand.u32 1, %s3528_s28   ;;  %s4209_s12 = sld [smem:[#allocation33_spill]]  ;;  %vm2254_vm3 = vcmask 73728  }
  0x45   : > { %v689_v8 = vpack.c.bf16 %v686_v6, %v686_v6  ;;  %v690_v9 = vpack.c.bf16 %v687_v7, %v687_v7  ;;  %919 = vmatpush.bf16.msra.mxu3 %v3014_v20  ;;  %v3037_v34 = vld [vmem:[%s4153_s3 + $0xa8] sm:$0xff]  ;;  %v3028_v36 = vld [vmem:[%s4153_s3 + $0x60] sm:$0xff]  ;;  %v3027_v41 = vld [vmem:[%s4153_s3 + $0x58] sm:$0xff]  ;;  %s4210_s19 = sld [smem:[#allocation32_spill]]  ;;  %s679_s21 = scalar_lea.vmem [#allocation14], %s678_s1 }
  0x46   : > { %749 = vmatpush.bf16.msra.mxu0 %v3002_v10  ;;  %784 = vmatpush.bf16.msra.mxu1 %v2999_v11  ;;  %v3021_v35 = vld [vmem:[%s4153_s3 + $0x28] sm:$0xff]  ;;  %v3036_v37 = vld [vmem:[%s4153_s3 + $0xa0] sm:$0xff]  ;;  %v3019_v42 = vld [vmem:[%s4153_s3 + $0x18] sm:$0xff]  ;;  %s2267_s17 = sshll.u32 %s679_s21, 4  ;;  %s2257_s2 = scalar_lea.sflag [#allocation4], %s678_s1  ;;  %s2268_s17 = int_to_ptr.vmem [resolvable:$true] %s2267_s17 }
  0x47   : > { %v693_v12 = vunpack.c.l.b16 %v689_v8  ;;  %v694_v13 = vunpack.c.l.b16 %v690_v9  ;;  %833 = vmatpush.bf16.msra.mxu2 %v3005_v15  ;;  %v3020_v38 = vld [vmem:[%s4153_s3 + $0x20] sm:$0xff]  ;;  %v3013_v40 = vld [vmem:[%s4155_s5 + $0x28] sm:$0xff]  ;;  %v3034_v43 = vld [vmem:[%s4153_s3 + $0x90] sm:$0xff] }
  0x48   : > { %v3012_v44 = vld [vmem:[%s4155_s5 + $0x20] sm:$0xff]  ;;  %v3026_v45 = vld [vmem:[%s4153_s3 + $0x50] sm:$0xff]  ;;  %v3033_v47 = vld [vmem:[%s4153_s3 + $0x88] sm:$0xff] }
  0x49   : > { %v695_v18 = vpack.c.b16 %v694_v13, %v693_v12  ;;  %920 = vmatpush.bf16.msra.mxu3 %v3013_v40  ;;  %v3018_v46 = vld [vmem:[%s4153_s3 + $0x10] sm:$0xff]  ;;  %v3011_v48 = vld [vmem:[%s4155_s5 + $0x18] sm:$0xff]  ;;  %v3025_v49 = vld [vmem:[%s4153_s3 + $0x48] sm:$0xff] }
  0x4a   : > { %1014 = vmatpush.bf16.msrb.mxu0 %v3031_v17  ;;  %1076 = vmatpush.bf16.msrb.mxu1 %v3023_v19  ;;  %v3017_v50 = vld [vmem:[%s4153_s3 + $0x8] sm:$0xff]  ;;  %v3032_v51 = vld [vmem:[%s4153_s3 + $0x80] sm:$0xff]  ;;  %v3010_v52 = vld [vmem:[%s4155_s5 + $0x10] sm:$0xff]  ;;  %s2265_s18 = scalar_lea.hbm %s4209_s12, %s3664_s0  ;;  %s3478_s26 = scalar_lea.hbm %s4209_s12, 2 }
  0x4b   : > { %v697_v21 = vshrl.u32 %v695_v18, 16  ;;  %v700_v22 = vshll.u32 %v695_v18, 16  ;;  %1155 = vmatpush.bf16.msrb.mxu2 %v3039_v16  ;;  %2425 = vmatmul.msk.bf16.vlgmr.msra.gmra.mxu0 %vm739_vm0, %v695_v18  ;;  %v3024_v53 = vld [vmem:[%s4153_s3 + $0x40] sm:$0xff]  ;;  %v3009_v56 = vld [vmem:[%s4155_s5 + $0x8] sm:$0xff]  ;;  %v3063_v58 = vld [vmem:[%s4157_s7 + $0xb8] sm:$0xff]  ;;  %s2269_s29 = sshll.u32 %s2265_s18, 4  ;;  %s2270_s29 = int_to_ptr.hbm [resolvable:$true] %s2269_s29 }
  0x4c   : > { %v3016_v54 = vld [vmem:[%s4153_s3] sm:$0xff]  ;;  %v3241_v2 = vld [vmem:[#allocation5] ss:$0 sm:$0xff]  ;;  %v3062_v11 = vld [vmem:[%s4157_s7 + $0xb0] sm:$0xff]  ;;  %s3472_s24 = sshra.s32 %s2270_s29, 4  ;;  %s3473_s24 = int_to_ptr.hbm [resolvable:$true] %s3472_s24 }
  0x4d   : > { %v699_v24 = vrot.slane %v697_v21, 7  ;;  %v791_v26 = vrot.slane %v700_v22, 1  ;;  %921 = vmatpush.bf16.msra.mxu3 %v3012_v44  ;;  %v3008_v57 = vld [vmem:[%s4155_s5] sm:$0xff]  ;;  %v3061_v12 = vld [vmem:[%s4157_s7 + $0xa8] sm:$0xff]  ;;  %v3047_v13 = vld [vmem:[%s4157_s7 + $0x38] sm:$0xff]  ;;  %s3474_s27 = scalar_lea.hbm %s3473_s24, 1  ;;  %p3479_p3 = scmp.lt.s32.totalorder %s3473_s24, %s4209_s12 }
  0x4e   : > { %1015 = vmatpush.bf16.msrb.mxu0 %v3030_v23  ;;  %1077 = vmatpush.bf16.msrb.mxu1 %v3022_v28  ;;  %v3055_v14 = vld [vmem:[%s4157_s7 + $0x78] sm:$0xff]  ;;  %v3060_v15 = vld [vmem:[%s4157_s7 + $0xa0] sm:$0xff]  ;;  %v3046_v16 = vld [vmem:[%s4157_s7 + $0x30] sm:$0xff]  ;;  %p3475_p0 = scmp.ne.s32.totalorder %s3473_s24, %s3474_s27  ;;  %p3480_p4 = scmp.lt.s32.totalorder %s3478_s26, %s3474_s27 }
  0x4f   : > { %v702_v29 = vor.u32 %v700_v22, %v699_v24  ;;  %v792_v30 = vor.u32 %v791_v26, %v697_v21  ;;  %1156 = vmatpush.bf16.msrb.mxu2 %v3038_v27  ;;  %v3054_v17 = vld [vmem:[%s4157_s7 + $0x70] sm:$0xff]  ;;  %v3059_v18 = vld [vmem:[%s4157_s7 + $0x98] sm:$0xff]  ;;  %v3045_v19 = vld [vmem:[%s4157_s7 + $0x28] sm:$0xff] }
  0x50   : > { %v3053_v20 = vld [vmem:[%s4157_s7 + $0x68] sm:$0xff]  ;;  %v3058_v21 = vld [vmem:[%s4157_s7 + $0x90] sm:$0xff]  ;;  %v3044_v22 = vld [vmem:[%s4157_s7 + $0x20] sm:$0xff]  ;;  %p3476_p1 = pnand %p3475_p0, %p3681_p5  ;;  %p3481_p7 = por %p3480_p4, %p3479_p3 }
  0x51   : > { %v707_v32 = vsel %vm3797_vm5, 0, %v702_v29  ;;  %v797_v33 = vsel %vm796_vm6, %v792_v30, 0  ;;  %922 = vmatpush.bf16.msra.mxu3 %v3011_v48  ;;  %v3052_v23 = vld [vmem:[%s4157_s7 + $0x60] sm:$0xff]  ;;  %v3057_v24 = vld [vmem:[%s4157_s7 + $0x88] sm:$0xff]  ;;  %v3043_v26 = vld [vmem:[%s4157_s7 + $0x18] sm:$0xff] }
  0x52   : > { %2438 = vmatmul.msk.bf16.vlgmr.msra.gmra.mxu1 %vm739_vm0, %v707_v32  ;;  %2451 = vmatmul.msk.bf16.vlgmr.msra.gmra.mxu2 %vm739_vm0, %v797_v33  ;;  %v3051_v27 = vld [vmem:[%s4157_s7 + $0x58] sm:$0xff]  ;;  %v3056_v28 = vld [vmem:[%s4157_s7 + $0x80] sm:$0xff]  ;;  %v3042_v30 = vld [vmem:[%s4157_s7 + $0x10] sm:$0xff]  ;;  %vm1792_vm0 = vcmask 1044480   ;;  %p3477_p2 = pneg %p3476_p1 }
  0x53   : > { %1016 = vmatpush.bf16.msrb.mxu0 %v3029_v31  ;;  %1157 = vmatpush.bf16.msrb.mxu2 %v3037_v34  ;;  %v3095_v29 = vld [vmem:[#allocation10 + $0x38] sm:$0xff]  ;;  %v3050_v31 = vld [vmem:[%s4157_s7 + $0x50] sm:$0xff]  ;;  %v3094_v32 = vld [vmem:[#allocation10 + $0x30] sm:$0xff] }
  0x54   : > { %1078 = vmatpush.bf16.msrb.mxu1 %v3021_v35  ;;  %v3041_v33 = vld [vmem:[%s4157_s7 + $0x8] sm:$0xff]  ;;  %v3093_v35 = vld [vmem:[#allocation10 + $0x28] sm:$0xff]  ;;  %vm3985_vm10 = vmand %vm1209_vm8, %vm1210_vm7  ;;  %p3482_p8 = pnand %p3481_p7, %p3477_p2 }
  0x55   : > { %923 = vmatpush.bf16.msra.mxu3 %v3010_v52  ;;  %v3049_v34 = vld [vmem:[%s4157_s7 + $0x48] sm:$0xff]  ;;  %vm4003_vm14 = vmand %vm1218_vm9, %vm1219_vm11 }
  0x56   : > { %v3092_v40 = vld [vmem:[#allocation10 + $0x20] sm:$0xff]  ;;  %v3242_v44 = vld [vmem:[#allocation7] ss:$0 sm:$0xff]  ;;  %vm4020_vm15 = vmand %vm1227_vm12, %vm1228_vm13 }
  0x57   : > { %1017 = vmatpush.bf16.msrb.mxu0 %v3028_v36  ;;  %1158 = vmatpush.bf16.msrb.mxu2 %v3036_v37  ;;  %v3099_v25 = vld [vmem:[#allocation13 + $0x18] sm:$0xff] }
  0x58   : > { %1079 = vmatpush.bf16.msrb.mxu1 %v3020_v38  ;;  %v3040_v38 = vld [vmem:[%s4157_s7] sm:$0xff] }
  0x59   : > { %924 = vmatpush.bf16.msra.mxu3 %v3009_v56 }
  0x5b   : > { %1159 = vmatpush.bf16.msrb.mxu2 %v3035_v39  ;;  %1018 = vmatpush.bf16.msrb.mxu0 %v3027_v41  ;;  %v3048_v39 = vld [vmem:[%s4157_s7 + $0x40] sm:$0xff] }
  0x5c   : > { %1080 = vmatpush.bf16.msrb.mxu1 %v3019_v42 }
  0x5d   : > { %925 = vmatpush.bf16.msra.mxu3 %v3008_v57  ;;  %v3089_v57 = vld [vmem:[#allocation10 + $0x8] sm:$0xff] }
  0x5f   : > { %1160 = vmatpush.bf16.msrb.mxu2 %v3034_v43  ;;  %1019 = vmatpush.bf16.msrb.mxu0 %v3026_v45  ;;  %v3243_v45 = vld [vmem:[%s4156_s6] ss:$0 sm:$0xff] }
  0x60   : > { %1081 = vmatpush.bf16.msrb.mxu1 %v3018_v46  ;;  %v3091_v46 = vld [vmem:[#allocation10 + $0x18] sm:$0xff] }
  0x61   : > { %1339 = vmatpush.bf16.msrb.mxu3 %v3055_v14 }
  0x63   : > { %1161 = vmatpush.bf16.msrb.mxu2 %v3033_v47  ;;  %1020 = vmatpush.bf16.msrb.mxu0 %v3025_v49 }
  0x64   : > { %1082 = vmatpush.bf16.msrb.mxu1 %v3017_v50  ;;  %v3090_v50 = vld [vmem:[#allocation10 + $0x10] sm:$0xff] }
  0x65   : > { %1340 = vmatpush.bf16.msrb.mxu3 %v3054_v17 }
  0x67   : > { %1162 = vmatpush.bf16.msrb.mxu2 %v3032_v51  ;;  %1021 = vmatpush.bf16.msrb.mxu0 %v3024_v53 }
  0x68   : > { %1083 = vmatpush.bf16.msrb.mxu1 %v3016_v54 }
  0x69   : > { %1341 = vmatpush.bf16.msrb.mxu3 %v3053_v20 }
  0x6a   : > { %1163 = vmatmul.bf16.vlgmr.msrb.gmra.mxu2 %v3547_v55  ;;  %1022 = vmatmul.bf16.vlgmr.msrb.gmra.mxu0 %v3547_v55 }
  0x6b   : > { %1084 = vmatmul.bf16.vlgmr.msrb.gmra.mxu1 %v3547_v55  ;;  %1400 = vmatpush.bf16.msra.mxu0 %v3047_v13 }
  0x6c   : > { %1496 = vmatpush.bf16.msra.mxu1 %v3063_v58 }
  0x6d   : > { %1342 = vmatpush.bf16.msrb.mxu3 %v3052_v23 }
  0x6f   : > { %1401 = vmatpush.bf16.msra.mxu0 %v3046_v16  ;;  %v3087_v16 = vld [vmem:[#allocation8 + $0xb8] sm:$0xff] }
  0x70   : > { %1497 = vmatpush.bf16.msra.mxu1 %v3062_v11 }
  0x71   : > { %1343 = vmatpush.bf16.msrb.mxu3 %v3051_v27 }
  0x73   : > { %1402 = vmatpush.bf16.msra.mxu0 %v3045_v19 }
  0x74   : > { %1498 = vmatpush.bf16.msra.mxu1 %v3061_v12  ;;  %v3071_v12 = vld [vmem:[#allocation8 + $0x38] sm:$0xff] }
  0x75   : > { %1344 = vmatpush.bf16.msrb.mxu3 %v3050_v31 }
  0x77   : > { %1403 = vmatpush.bf16.msra.mxu0 %v3044_v22 }
  0x78   : > { %1499 = vmatpush.bf16.msra.mxu1 %v3060_v15  ;;  %v3078_v15 = vld [vmem:[#allocation8 + $0x70] sm:$0xff] }
  0x79   : > { %1345 = vmatpush.bf16.msrb.mxu3 %v3049_v34 }
  0x7b   : > { %1404 = vmatpush.bf16.msra.mxu0 %v3043_v26 }
  0x7c   : > { %1500 = vmatpush.bf16.msra.mxu1 %v3059_v18  ;;  %v3075_v18 = vld [vmem:[#allocation8 + $0x58] sm:$0xff] }
  0x7d   : > { %1346 = vmatpush.bf16.msrb.mxu3 %v3048_v39 }
  0x7f   : > { %1405 = vmatpush.bf16.msra.mxu0 %v3042_v30 }
  0x80   : > { %1501 = vmatpush.bf16.msra.mxu1 %v3058_v21 }
  0x83   : > { %1406 = vmatpush.bf16.msra.mxu0 %v3041_v33  ;;  %v3119_v33 = vld [vmem:[#allocation11 + $0x78] sm:$0xff] }
  0x84   : > { %1502 = vmatpush.bf16.msra.mxu1 %v3057_v24 }
  0x87   : > { %1407 = vmatpush.bf16.msra.mxu0 %v3040_v38 }
  0x88   : > { %1503 = vmatpush.bf16.msra.mxu1 %v3056_v28 }
  0x8b   : > { %1753 = vmatpush.bf16.msrb.mxu0 %v3087_v16  ;;  %v3070_v16 = vld [vmem:[#allocation8 + $0x30] sm:$0xff] }
  0x8c   : > { %1873 = vmatpush.bf16.msrb.mxu1 %v3095_v29 }
  0x90   : > { %1874 = vmatpush.bf16.msrb.mxu1 %v3094_v32  ;;  %v3077_v32 = vld [vmem:[#allocation8 + $0x68] sm:$0xff] }
  0x94   : > { %1875 = vmatpush.bf16.msrb.mxu1 %v3093_v35 }
  0x98   : > { %1876 = vmatpush.bf16.msrb.mxu1 %v3092_v40 }
  0x9c   : > { %1877 = vmatpush.bf16.msrb.mxu1 %v3091_v46 }
  0xa0   : > { %1878 = vmatpush.bf16.msrb.mxu1 %v3090_v50 }
  0xa4   : > { %1879 = vmatpush.bf16.msrb.mxu1 %v3089_v57 }
  0xc8   : > { %v751_v59 = vpop.f32.mrf.mxu0 }
  0xcf   : > { %v786_v60 = vpop.f32.mrf.mxu1 }
  0xd0   : > { %v787_v62 = vadd.f32 %v786_v60, %v751_v59  ;;  %v753_v63 = vpop.f32.mrf.mxu0 }
  0xd5   : > { %v835_v61 = vpop.f32.mrf.mxu2 }
  0xd6   : > { %v840_v1 = vadd.f32 %v835_v61, %v787_v62  ;;  %v3088_v61 = vld [vmem:[#allocation10] sm:$0xff] }
  0xd7   : > { %v788_v0 = vpop.f32.mrf.mxu1  ;;  %1880 = vmatpush.bf16.msrb.mxu1 %v3088_v61 }
  0xd8   : > { %v789_v3 = vadd.f32 %v788_v0, %v753_v63  ;;  %v845_v5 = vadd.f32 %v3241_v2, %v840_v1 }
  0xda   : > { %v847_v8 = vmax.f32 %v845_v5, 0.0 }
  0xdd   : > { %v837_v4 = vpop.f32.mrf.mxu2 }
  0xde   : > { %v841_v6 = vadd.f32 %v837_v4, %v789_v3 }
  0xe0   : > { %v846_v7 = vadd.f32 %v3241_v2, %v841_v6 }
  0xe2   : > { %v848_v9 = vmax.f32 %v846_v7, 0.0 }
  0xe4   : > { %v849_v10 = vpack.c.bf16 %v848_v9, %v847_v8  ;;  %v3079_v8 = vld [vmem:[#allocation8 + $0x78] sm:$0xff] }
  0xe5   : > { %1610 = vmatpush.bf16.msra.mxu2 %v3079_v8 }
  0xe6   : > { %926 = vmatmul.bf16.vlgmr.msra.gmra.mxu3 %v849_v10 }
  0xe7   : > { %v1023_v36 = vpop.f32.mrf.mxu0  ;;  %1671 = vmatpush.bf16.msra.mxu3 %v3071_v12 }
  0xe8   : > { %v1085_v37 = vpop.f32.mrf.mxu1 }
  0xe9   : > { %v1086_v41 = vadd.f32 %v1085_v37, %v1023_v36  ;;  %1611 = vmatpush.bf16.msra.mxu2 %v3078_v15 }
  0xeb   : > { %1672 = vmatpush.bf16.msra.mxu3 %v3070_v16  ;;  %v3113_v16 = vld [vmem:[#allocation11 + $0x48] sm:$0xff] }
  0xed   : > { %v1164_v42 = vpop.f32.mrf.mxu2  ;;  %1612 = vmatpush.bf16.msra.mxu2 %v3077_v32  ;;  %v3080_v32 = vld [vmem:[#allocation8 + $0x80] sm:$0xff] }
  0xee   : > { %v1169_v43 = vadd.f32 %v1164_v42, %v1086_v41 }
  0xef   : > { %v1025_v47 = vpop.f32.mrf.mxu0 }
  0xf0   : > { %v1087_v48 = vpop.f32.mrf.mxu1  ;;  %v1174_v49 = vadd.f32 %v3242_v44, %v1169_v43 }
  0xf1   : > { %v1088_v52 = vadd.f32 %v1087_v48, %v1025_v47  ;;  %v3112_v48 = vld [vmem:[#allocation11 + $0x40] sm:$0xff] }
  0xf5   : > { %v1166_v54 = vpop.f32.mrf.mxu2 }
  0xf6   : > { %v1170_v58 = vadd.f32 %v1166_v54, %v1088_v52 }
  0xf8   : > { %v1175_v63 = vadd.f32 %v3242_v44, %v1170_v58 }
 0x169   : > { %v927_v51 = vpop.f32.mrf.mxu3 }
 0x16a   : > { %v928_v53 = vadd.f32 %v3243_v45, %v927_v51  ;;  %v3076_v51 = vld [vmem:[#allocation8 + $0x60] sm:$0xff] }
 0x16b   : > { %1613 = vmatpush.bf16.msra.mxu2 %v3076_v51  ;;  %v3116_v51 = vld [vmem:[#allocation11 + $0x60] sm:$0xff] }
 0x16c   : > { %v3964_v56 = vadd.f32 %v1174_v49, %v928_v53 }
 0x16e   : > { %v1179_v59 = vmax.f32 %v3964_v56, 0.0  ;;  %v1772_v2 = vrot.slane %v3964_v56, 1  ;;  %v1774_v5 = vrot.slane %v3964_v56, 2  ;;  %v1776_v19 = vrot.slane %v3964_v56, 3 }
 0x16f   : > { %v1798_v30 = vrot.slane %v3964_v56, 4  ;;  %1614 = vmatpush.bf16.msra.mxu2 %v3075_v18  ;;  %v3106_v18 = vld [vmem:[#allocation11 + $0x10] sm:$0xff] }
 0x170   : > { %v1181_v60 = vpack.c.bf16 %v1179_v59, %v1179_v59  ;;  %v1787_v10 = vsel %vm704_vm1, %v3964_v56, %v1772_v2  ;;  %v1800_v24 = vsel %vm704_vm1, %v1772_v2, %v1774_v5 }
 0x171   : > { %v929_v62 = vpop.f32.mrf.mxu3  ;;  %v1788_v23 = vsel %vm1209_vm8, %v1787_v10, %v1774_v5  ;;  %v1801_v36 = vsel %vm1209_vm8, %v1800_v24, %v1776_v19  ;;  %v3083_v24 = vld [vmem:[#allocation8 + $0x98] sm:$0xff] }
 0x172   : > { %v930_v0 = vadd.f32 %v3243_v45, %v929_v62  ;;  %v1184_v1 = vunpack.c.l.b16 %v1181_v60  ;;  %v1203_v14 = vsel %vm3797_vm5, 0, %v1181_v60  ;;  %v1789_v35 = vsel %vm1218_vm9, %v1788_v23, %v1776_v19  ;;  %v3085_v19 = vld [vmem:[#allocation8 + $0xa8] sm:$0xff] }
 0x173   : > { %v1802_v53 = vsel %vm1218_vm9, %v1801_v36, %v1798_v30  ;;  %v3073_v23 = vld [vmem:[#allocation8 + $0x48] sm:$0xff]  ;;  %v3103_v36 = vld [vmem:[#allocation13 + $0x38] sm:$0xff] }
 0x174   : > { %v3968_v3 = vadd.f32 %v1175_v63, %v930_v0  ;;  %v3970_v4 = vpack.c.b16 %v1184_v1, %v1184_v1  ;;  %v3081_v30 = vld [vmem:[#allocation8 + $0x88] sm:$0xff] }
 0x176   : > { %v1180_v6 = vmax.f32 %v3968_v3, 0.0  ;;  %v1187_v7 = vshrl.u32 %v3970_v4, 16  ;;  %v1189_v9 = vrot.slane %v3970_v4, 1  ;;  %v1247_v11 = vshll.u32 %v3970_v4, 16 }
 0x177   : > { %v1779_v34 = vrot.slane %v3968_v3, 4  ;;  %v1781_v43 = vrot.slane %v3968_v3, 5  ;;  %v1414_v45 = vrot.slane %v3970_v4, 2  ;;  %v1783_v56 = vrot.slane %v3968_v3, 6 }
 0x178   : > { %v3979_v13 = vpack.c.bf16 %v1180_v6, %v1180_v6  ;;  %v1207_v17 = vsel %vm704_vm1, %v1203_v14, %v1187_v7  ;;  %v1249_v20 = vrot.slane %v1247_v11, 1  ;;  %v1191_v21 = vrot.slane %v1187_v7, 1 }
 0x179   : > { %v1417_v27 = vsel %vm3797_vm5, %v1187_v7, %v1189_v9  ;;  %v1212_v29 = vsel %vm3985_vm10, %v1207_v17, %v1189_v9  ;;  %v1251_v37 = vrot.slane %v1247_v11, 2  ;;  %v1791_v62 = vsel %vm1227_vm12, %v1789_v35, %v1779_v34  ;;  %v3086_v17 = vld [vmem:[#allocation8 + $0xb0] sm:$0xff]  ;;  %v3111_v34 = vld [vmem:[#allocation11 + $0x38] sm:$0xff] }
 0x17a   : > { %v1193_v22 = vunpack.c.l.b16 %v3979_v13  ;;  %v1258_v26 = vsel %vm3797_vm5, %v1181_v60, %v1249_v20  ;;  %v1419_v41 = vsel %vm704_vm1, %v1417_v27, %v1191_v21  ;;  %v1216_v42 = vsel %vm1209_vm8, %v1212_v29, %v1191_v21  ;;  %1754 = vmatpush.bf16.msrb.mxu0 %v3086_v17  ;;  %v3074_v20 = vld [vmem:[#allocation8 + $0x50] sm:$0xff]  ;;  %v3068_v21 = vld [vmem:[#allocation8 + $0x20] sm:$0xff]  ;;  %v3065_v29 = vld [vmem:[#allocation8 + $0x8] sm:$0xff] }
 0x17b   : > { %v1261_v31 = vsel %vm704_vm1, %v1258_v26, %v1189_v9  ;;  %v1421_v54 = vsel %vm3985_vm10, %v1419_v41, %v1414_v45  ;;  %v1803_v1 = vsel %vm1227_vm12, %v1802_v53, %v1781_v43  ;;  %v1793_v6 = vsel %vm1792_vm0, %v1791_v62, %v1781_v43  ;;  %1615 = vmatpush.bf16.msra.mxu2 %v3074_v20  ;;  %v3072_v26 = vld [vmem:[#allocation8 + $0x40] sm:$0xff]  ;;  %v3066_v27 = vld [vmem:[#allocation8 + $0x10] sm:$0xff]  ;;  %v3127_v35 = vld [vmem:[#allocation11 + $0xb8] sm:$0xff] }
 0x17c   : > { %v1194_v28 = vpack.c.b16 %v1193_v22, %v1193_v22  ;;  %v1263_v44 = vsel %vm3985_vm10, %v1261_v31, %v1251_v37  ;;  %vm1794_vm1 = vcmask 1045504   ;;  %v1804_v7 = vsel %vm1792_vm0, %v1803_v1, %v1783_v56  ;;  %v3084_v22 = vld [vmem:[#allocation8 + $0xa0] sm:$0xff]  ;;  %v3102_v41 = vld [vmem:[#allocation13 + $0x30] sm:$0xff]  ;;  %v3117_v43 = vld [vmem:[#allocation11 + $0x68] sm:$0xff] }
 0x17d   : > { %v1785_v8 = vrot.slane %v3968_v3, 7  ;;  %v1795_v9 = vsel %vm1794_vm1, %v1793_v6, %v1783_v56  ;;  %v3064_v31 = vld [vmem:[#allocation8] sm:$0xff]  ;;  %v3125_v45 = vld [vmem:[#allocation11 + $0xa8] sm:$0xff]  ;;  %v3123_v17 = vld [vmem:[#allocation11 + $0x98] sm:$0xff] }
 0x17e   : > { %v1195_v38 = vrot.slane %v1194_v28, 6  ;;  %v1198_v39 = vshrl.u32 %v1194_v28, 16  ;;  %v1253_v40 = vshll.u32 %v1194_v28, 16  ;;  %v1201_v52 = vrot.slane %v1194_v28, 7  ;;  %1755 = vmatpush.bf16.msrb.mxu0 %v3085_v19  ;;  %v3082_v28 = vld [vmem:[#allocation8 + $0x90] sm:$0xff]  ;;  %v3105_v19 = vld [vmem:[#allocation11 + $0x8] sm:$0xff] }
 0x17f   : > { %v1805_v10 = vsel %vm1794_vm1, %v1804_v7, %v1785_v8  ;;  %v1797_v11 = vsel %vm1796_vm2, %v1795_v9, %v1785_v8  ;;  %1616 = vmatpush.bf16.msra.mxu2 %v3073_v23  ;;  %v3098_v20 = vld [vmem:[#allocation13 + $0x10] sm:$0xff]  ;;  %v3097_v23 = vld [vmem:[#allocation13 + $0x8] sm:$0xff] }
 0x180   : > { %v1200_v46 = vrot.slane %v1198_v39, 6  ;;  %v1221_v47 = vsel %vm4003_vm14, %v1216_v42, %v1195_v38  ;;  %v1255_v49 = vrot.slane %v1253_v40, 7  ;;  %v1266_v50 = vsel %vm1209_vm8, %v1263_v44, %v1195_v38  ;;  %v3118_v38 = vld [vmem:[#allocation11 + $0x70] sm:$0xff]  ;;  %v3109_v44 = vld [vmem:[#allocation11 + $0x28] sm:$0xff] }
 0x181   : > { %v1416_v59 = vrot.slane %v1198_v39, 7  ;;  %v1806_v12 = vsel %vm1796_vm2, %v1805_v10, %v3968_v3  ;;  %v3067_v3 = vld [vmem:[#allocation8 + $0x18] sm:$0xff]  ;;  %v3110_v39 = vld [vmem:[#allocation11 + $0x30] sm:$0xff]  ;;  %v3101_v10 = vld [vmem:[#allocation13 + $0x28] sm:$0xff] }
 0x182   : > { %v1225_v57 = vsel %vm1218_vm9, %v1221_v47, %v1200_v46  ;;  %v1268_v58 = vsel %vm4003_vm14, %v1266_v50, %v1255_v49  ;;  %v1423_v60 = vsel %vm1209_vm8, %v1421_v54, %v1200_v46  ;;  %v1807_v14 = vadd.f32 %v1806_v12, %v1797_v11  ;;  %1756 = vmatpush.bf16.msrb.mxu0 %v3084_v22  ;;  %v3244_v49 = vld [vmem:[%s4158_s8] ss:$0 sm:$0xff]  ;;  %v3124_v12 = vld [vmem:[#allocation11 + $0xa0] sm:$0xff] }
 0x183   : > { %v1230_v61 = vsel %vm4020_vm15, %v1225_v57, %v1201_v52  ;;  %v1271_v63 = vsel %vm1218_vm9, %v1268_v58, %v1201_v52  ;;  %v1425_v0 = vsel %vm4003_vm14, %v1423_v60, %v1201_v52  ;;  %1617 = vmatpush.bf16.msra.mxu2 %v3072_v26  ;;  %v3108_v52 = vld [vmem:[#allocation11 + $0x20] sm:$0xff]  ;;  %v3115_v57 = vld [vmem:[#allocation11 + $0x58] sm:$0xff]  ;;  %v3114_v11 = vld [vmem:[#allocation11 + $0x50] sm:$0xff] }
 0x184   : > { %1408 = vmatmul.bf16.vlgmr.msra.gmra.mxu0 %v1230_v61  ;;  %v1273_v2 = vsel %vm4020_vm15, %v1271_v63, %v1253_v40  ;;  %v1428_v4 = vsel %vm1218_vm9, %v1425_v0, %v1416_v59  ;;  %v1808_v15 = vpack.c.bf16 %v1807_v14, %v1807_v14  ;;  %v3126_v40 = vld [vmem:[#allocation11 + $0xb0] sm:$0xff]  ;;  %v3107_v14 = vld [vmem:[#allocation11 + $0x18] sm:$0xff]  ;;  %v3104_v22 = vld [vmem:[#allocation11] sm:$0xff] }
 0x185   : > { %1347 = vmatmul.bf16.vlgmr.msrb.gmra.mxu3 %v1273_v2  ;;  %v1430_v5 = vsel %vm4020_vm15, %v1428_v4, %v3979_v13  ;;  %v3069_v13 = vld [vmem:[#allocation8 + $0x28] sm:$0xff] }
 0x186   : > { %1504 = vmatmul.bf16.vlgmr.msra.gmra.mxu1 %v1430_v5  ;;  %1673 = vmatpush.bf16.msra.mxu3 %v3069_v13  ;;  %v3122_v13 = vld [vmem:[#allocation11 + $0x90] sm:$0xff] }
 0x187   : > { %1757 = vmatpush.bf16.msrb.mxu0 %v3083_v24  ;;  %2191 = vmatpush.bf16.msra.mxu1 %v3127_v35  ;;  %v3096_v24 = vld [vmem:[#allocation13] sm:$0xff] }
 0x188   : > { %1957 = vmatpush.bf16.msrb.mxu2 %v3103_v36 }
 0x18a   : > { %1674 = vmatpush.bf16.msra.mxu3 %v3068_v21  ;;  %v3121_v21 = vld [vmem:[#allocation11 + $0x88] sm:$0xff] }
 0x18b   : > { %1758 = vmatpush.bf16.msrb.mxu0 %v3082_v28  ;;  %2192 = vmatpush.bf16.msra.mxu1 %v3126_v40  ;;  %v2230_v40 = vld [vmem:[%s4166_s16 + $0x68] sm:$0xff] }
 0x18c   : > { %1958 = vmatpush.bf16.msrb.mxu2 %v3102_v41  ;;  %v2229_v41 = vld [vmem:[%s4166_s16 + $0x60] sm:$0xff] }
 0x18e   : > { %1675 = vmatpush.bf16.msra.mxu3 %v3067_v3  ;;  %v3120_v3 = vld [vmem:[#allocation11 + $0x80] sm:$0xff] }
 0x18f   : > { %1759 = vmatpush.bf16.msrb.mxu0 %v3081_v30  ;;  %2193 = vmatpush.bf16.msra.mxu1 %v3125_v45 }
 0x190   : > { %1959 = vmatpush.bf16.msrb.mxu2 %v3101_v10 }
 0x192   : > { %1676 = vmatpush.bf16.msra.mxu3 %v3066_v27 }
 0x193   : > { %1760 = vmatpush.bf16.msrb.mxu0 %v3080_v32  ;;  %2194 = vmatpush.bf16.msra.mxu1 %v3124_v12 }
 0x196   : > { %1881 = vmatmul.bf16.vlgmr.msrb.gmra.mxu1 %v1808_v15  ;;  %1677 = vmatpush.bf16.msra.mxu3 %v3065_v29  ;;  %v3100_v15 = vld [vmem:[#allocation13 + $0x20] sm:$0xff] }
 0x197   : > { %2113 = vmatpush.bf16.msra.mxu0 %v3111_v34  ;;  %1960 = vmatpush.bf16.msrb.mxu2 %v3100_v15 }
 0x198   : > { %2195 = vmatpush.bf16.msra.mxu1 %v3123_v17 }
 0x19a   : > { %1678 = vmatpush.bf16.msra.mxu3 %v3064_v31  ;;  %v3245_v31 = vld [vmem:[%s4160_s10] ss:$0 sm:$0xff] }
 0x19b   : > { %2114 = vmatpush.bf16.msra.mxu0 %v3110_v39  ;;  %1961 = vmatpush.bf16.msrb.mxu2 %v3099_v25  ;;  %v2231_v39 = vld [vmem:[%s4166_s16 + $0x70] sm:$0xff] }
 0x19c   : > { %2196 = vmatpush.bf16.msra.mxu1 %v3122_v13 }
 0x19e   : > { %2052 = vmatpush.bf16.msrb.mxu3 %v3119_v33 }
 0x19f   : > { %2115 = vmatpush.bf16.msra.mxu0 %v3109_v44  ;;  %1962 = vmatpush.bf16.msrb.mxu2 %v3098_v20 }
 0x1a0   : > { %2197 = vmatpush.bf16.msra.mxu1 %v3121_v21 }
 0x1a2   : > { %2053 = vmatpush.bf16.msrb.mxu3 %v3118_v38 }
 0x1a3   : > { %2116 = vmatpush.bf16.msra.mxu0 %v3108_v52  ;;  %1963 = vmatpush.bf16.msrb.mxu2 %v3097_v23  ;;  %v2225_v52 = vld [vmem:[%s4166_s16 + $0x40] sm:$0xff] }
 0x1a4   : > { %2198 = vmatpush.bf16.msra.mxu1 %v3120_v3 }
 0x1a6   : > { %2054 = vmatpush.bf16.msrb.mxu3 %v3117_v43  ;;  %v2227_v43 = vld [vmem:[%s4166_s16 + $0x50] sm:$0xff] }
 0x1a7   : > { %2117 = vmatpush.bf16.msra.mxu0 %v3107_v14  ;;  %2199 = vmatmul.bf16.vlgmr.msra.gmra.mxu1 %v3547_v55 }
 0x1a8   : > { %1964 = vmatpush.bf16.msrb.mxu2 %v3096_v24 }
 0x1aa   : > { %2055 = vmatpush.bf16.msrb.mxu3 %v3116_v51  ;;  %v2226_v51 = vld [vmem:[%s4166_s16 + $0x48] sm:$0xff] }
 0x1ab   : > { %2118 = vmatpush.bf16.msra.mxu0 %v3106_v18 }
 0x1ae   : > { %2056 = vmatpush.bf16.msrb.mxu3 %v3115_v57  ;;  %v2221_v57 = vld [vmem:[%s4166_s16 + $0x20] sm:$0xff] }
 0x1af   : > { %2119 = vmatpush.bf16.msra.mxu0 %v3105_v19 }
 0x1b2   : > { %2057 = vmatpush.bf16.msrb.mxu3 %v3114_v11 }
 0x1b3   : > { %2120 = vmatpush.bf16.msra.mxu0 %v3104_v22 }
 0x1b6   : > { %2058 = vmatpush.bf16.msrb.mxu3 %v3113_v16  ;;  %v2233_v16 = vld [vmem:[%s4210_s19] sm:$0x1] }
 0x1ba   : > { %2059 = vmatpush.bf16.msrb.mxu3 %v3112_v48 }
 0x201   : > { %v1409_v37 = vpop.f32.mrf.mxu0 }
 0x203   : > { %v1505_v42 = vpop.f32.mrf.mxu1 }
 0x208   : > { %v1348_v46 = vpop.f32.mrf.mxu3 }
 0x209   : > { %v1410_v47 = vadd.f32 %v1409_v37, %v1348_v46  ;;  %v1411_v50 = vpop.f32.mrf.mxu0 }
 0x20b   : > { %v1509_v53 = vadd.f32 %v1505_v42, %v1410_v47  ;;  %v1507_v54 = vpop.f32.mrf.mxu1  ;;  %v2228_v42 = vld [vmem:[%s4166_s16 + $0x58] sm:$0xff] }
 0x20c   : > { %v2223_v54 = vld [vmem:[%s4166_s16 + $0x30] sm:$0xff] }
 0x20d   : > { %v1513_v56 = vadd.f32 %v3244_v49, %v1509_v53  ;;  %v2224_v53 = vld [vmem:[%s4166_s16 + $0x38] sm:$0xff] }
 0x20f   : > { %v1515_v58 = vmax.f32 %v1513_v56, 0.0  ;;  %v2222_v56 = vld [vmem:[%s4166_s16 + $0x28] sm:$0xff] }
 0x210   : > { %v1350_v59 = vpop.f32.mrf.mxu3 }
 0x211   : > { %v1516_v60 = vpack.c.bf16 %v1515_v58, %v1515_v58  ;;  %v2220_v58 = vld [vmem:[%s4166_s16 + $0x18] sm:$0xff]  ;;  %v2219_v59 = vld [vmem:[%s4166_s16 + $0x10] sm:$0xff] }
 0x213   : > { %v1518_v61 = vunpack.c.l.b16 %v1516_v60  ;;  %1618 = vmatmul.bf16.vlgmr.msra.gmra.mxu2 %v1516_v60  ;;  %v1882_v62 = vpop.f32.mrf.mxu1  ;;  %v2218_v60 = vld [vmem:[%s4166_s16 + $0x8] sm:$0xff] }
 0x215   : > { %v1519_v63 = vpack.c.b16 %v1518_v61, %v1518_v61  ;;  %v2217_v61 = vld [vmem:[%s4166_s16] sm:$0xff] }
 0x217   : > { %v1521_v0 = vshrl.u32 %v1519_v63, 16  ;;  %v1524_v1 = vshll.u32 %v1519_v63, 16 }
 0x219   : > { %v1523_v2 = vrot.slane %v1521_v0, 7  ;;  %v1684_v4 = vrot.slane %v1524_v1, 1 }
 0x21b   : > { %v1884_v5 = vpop.f32.mrf.mxu1  ;;  %v1526_v6 = vor.u32 %v1524_v1, %v1523_v2  ;;  %v1685_v7 = vor.u32 %v1684_v4, %v1521_v0  ;;  %v3246_v0 = vld [vmem:[%s4163_s13] ss:$0 sm:$0xff] }
 0x21c   : > { %v3247_v1 = vld [vmem:[%s4165_s15] ss:$0 sm:$0xff] }
 0x21d   : > { %v1528_v8 = vsel %vm3797_vm5, 0, %v1526_v6  ;;  %v1687_v9 = vsel %vm4020_vm15, %v1685_v7, 0 }
 0x21e   : > { %1679 = vmatmul.bf16.vlgmr.msra.gmra.mxu3 %v1528_v8  ;;  %1761 = vmatmul.bf16.vlgmr.msrb.gmra.mxu0 %v1687_v9 }
 0x224   : > { %v2200_v46 = vpop.f32.mrf.mxu1 }
 0x22c   : > { %v2202_v50 = vpop.f32.mrf.mxu1 }
 0x22e   : > { %2060 = vmatmul.bf16.vlgmr.msrb.gmra.mxu3 %v3547_v55  ;;  %2121 = vmatmul.bf16.vlgmr.msra.gmra.mxu0 %v3547_v55  ;;  %v2232_v55 = vld [vmem:[%s4166_s16 + $0x78] sm:$0xff] }
 0x22f   : > { %2234 = vmatpush.msra.mxu2 %v2232_v55 }
 0x231   : > { %2235 = vmatpush.msra.mxu2 %v2231_v39 }
 0x233   : > { %2236 = vmatpush.msra.mxu2 %v2230_v40 }
 0x235   : > { %2237 = vmatpush.msra.mxu2 %v2229_v41 }
 0x237   : > { %2238 = vmatpush.msra.mxu2 %v2228_v42 }
 0x239   : > { %2239 = vmatpush.msra.mxu2 %v2227_v43 }
 0x23b   : > { %2240 = vmatpush.msra.mxu2 %v2226_v51 }
 0x23d   : > { %2241 = vmatpush.msra.mxu2 %v2225_v52 }
 0x23f   : > { %2242 = vmatpush.msra.mxu2 %v2224_v53 }
 0x241   : > { %2243 = vmatpush.msra.mxu2 %v2223_v54 }
 0x243   : > { %2244 = vmatpush.msra.mxu2 %v2222_v56 }
 0x245   : > { %2245 = vmatpush.msra.mxu2 %v2221_v57 }
 0x247   : > { %2246 = vmatpush.msra.mxu2 %v2220_v58 }
 0x249   : > { %2247 = vmatpush.msra.mxu2 %v2219_v59 }
 0x24b   : > { %2248 = vmatpush.msra.mxu2 %v2218_v60 }
 0x24d   : > { %2249 = vmatpush.msra.mxu2 %v2217_v61 }
 0x296   : > { %v1619_v26 = vpop.f32.mrf.mxu2 }
 0x29b   : > { %v1762_v27 = vpop.f32.mrf.mxu0 }
 0x29e   : > { %v1621_v28 = vpop.f32.mrf.mxu2 }
 0x2a1   : > { %v1680_v29 = vpop.f32.mrf.mxu3 }
 0x2a2   : > { %v1681_v30 = vadd.f32 %v1680_v29, %v1619_v26 }
 0x2a3   : > { %v1764_v32 = vpop.f32.mrf.mxu0 }
 0x2a4   : > { %v1766_v33 = vadd.f32 %v1762_v27, %v1681_v30 }
 0x2a6   : > { %v1770_v34 = vadd.f32 %v3245_v31, %v1766_v33 }
 0x2a8   : > { %v1886_v35 = vadd.f32 %v1882_v62, %v1770_v34 }
 0x2a9   : > { %v1682_v36 = vpop.f32.mrf.mxu3 }
 0x2aa   : > { %v1887_v37 = vmax.f32 %v1886_v35, 0.0 }
 0x2ab   : > { %v2122_v45 = vpop.f32.mrf.mxu0 }
 0x2ac   : > { %v1888_v38 = vpack.c.bf16 %v1887_v37, %v1887_v37 }
 0x2ae   : > { %1965 = vmatmul.bf16.vlgmr.msrb.gmra.mxu2 %v1888_v38 }
 0x2b1   : > { %v2061_v44 = vpop.f32.mrf.mxu3 }
 0x2b2   : > { %v2123_v62 = vadd.f32 %v2122_v45, %v2061_v44 }
 0x2b3   : > { %v2124_v49 = vpop.f32.mrf.mxu0 }
 0x2b4   : > { %v2204_v63 = vadd.f32 %v2200_v46, %v2123_v62 }
 0x2b6   : > { %v2208_v2 = vadd.f32 %v3246_v0, %v2204_v63 }
 0x2b9   : > { %v2063_v47 = vpop.f32.mrf.mxu3 }
 0x331   : > { %v1966_v4 = vpop.f32.mrf.mxu2 }
 0x332   : > { %v1967_v5 = vadd.f32 %v3247_v1, %v1966_v4 }
 0x334   : > { %v2209_v6 = vadd.f32 %v2208_v2, %v1967_v5 }
 0x336   : > { %v2210_v7 = vmax.f32 %v2209_v6, 0.0 }
 0x338   : > { %v2211_v8 = vrot.slane %v2210_v7, 4 }
 0x339   : > { %v1968_v9 = vpop.f32.mrf.mxu2 }
 0x33a   : > { %v2212_v10 = vadd.f32 %v2211_v8, %v2210_v7 }
 0x33c   : > { %v2213_v11 = vrot.slane %v2212_v10, 2 }
 0x33e   : > { %v2214_v12 = vadd.f32 %v2213_v11, %v2212_v10 }
 0x340   : > { %v2215_v14 = vrot.slane %v2214_v12, 1 }
 0x342   : > { %v2216_v15 = vadd.f32 %v2215_v14, %v2214_v12 }
 0x344   : > { %2250 = vmatmul.f32.vlgmr.msra.gmra.mxu2 %v2216_v15 }
 0x3c7   : > { %v2251_v17 = vpop.f32.mrf.mxu2 }
 0x3c8   : > { %v2252_v18 = vadd.f32 %v2251_v17, %v2233_v16 }
 0x3ca   : > { %2255 = vst.msk [vmem:[%s679_s21] sm:$0x1] %vm2254_vm3, %v2252_v18 }
 0x3cb   : > { %3485 = shalt.err (!%p3482_p8)
}
 0x3cc   : > { %3156 = dma.vmem_to_hbm [thread:$0]  (%p3681_p5), %s2268_s17, 16, %s2270_s29, %s2257_s2  }
 0x3cd PF: > { %s4212_s1 = sld [smem:[#allocation22_spill]] }
 0x3ce   : > { %s4213_s18 = sld [smem:[#allocation20_spill]] }
 0x3d3   : > { %p3198_p9 = scmp.ge.s32.totalorder %s4212_s1, 2 }
 0x3d4   : > { %s2281_s25 = sand.u32 1, %s4213_s18  }
 0x3d5   : > { %p3181_p10 = pnand %p3198_p9, %p3685_p6  ;;  %s2282_s19 = scalar_lea.sflag [#allocation4], %s2281_s25 }
 0x3d7   : > { %p3182_p11 = pneg %p3181_p10 }
 0x3d9   : > { %3519 = dma.done.wait (%p3182_p11), %s2282_s19, 16  }
 0x3da   : > { %3521 = vsyncadd (%p3182_p11), %s2282_s19, 4294967280  ;;  %s4215_s30 = sld [smem:[#allocation23_spill]]  ;;  %s4218_s27 = smov %s3528_s28 }
 0x3db   : > { %s4216_s21 = sld [smem:[#allocation21_spill]] }
 0x3dc   : > { %s4217_s29 = sld [smem:[#allocation24_spill]] }
 0x3e0   : > { %p32_p12 = scmp.ge.s32.totalorder %s4215_s30, 4  }
 0x3e1   : > { %s4219_s28 = smov %s4216_s21 }
 0x3e2   :  { %34 = sbr.rel (!%p32_p12) target bundleno = 15 (0xf), region = 166 }
 0x3e7   :  { %2287 = vsyncpa [#allocation3], 1 }
 0x3e8   :  { %2289 = vsyncpa [#allocation3 + $0x1], 1 }
 0x3e9   :  { %2290 = vsyncpa [#allocation6], 1 }
 0x3ea   :  { %2291 = vsyncpa [#allocation9], 1 }
 0x3eb   :  { %2292 = vsyncpa [#allocation12], 1 }
 0x3ec   :  { %2293 = vsyncpa [#allocation4], 1 }
 0x3ed   :  { %2295 = vsyncpa [#allocation4 + $0x1], 1 }

</bundles_post_ra>
